<compile_context>
chip_gen: v6e
topology: v6e:2x2x1
jax: 0.10.0
libtpu: 0.0.40
codegen_flags: <defaults>
</compile_context>

<pallas_src>
import functools

import jax
import jax.numpy as jnp
from jax.experimental import pallas as pl
from jax.experimental.pallas import tpu as pltpu


def _round_up(x, m):
    return ((x + m - 1) // m) * m


# ----------------------------------------------------------------------------
# Pallas kernel: phase-decomposed fused transposed conv over a lane-packed strip
# ----------------------------------------------------------------------------
def _star_phase_kernel(x_ref, wb_ref, o_ref, xsh_ref, *, phases, n_taps, Mh, max_doff):
    # x_ref  : (C_in, Hp, W_in)          un-dilated, padded, lane-packed input strip
    #                                    (W_in >= W_acc + max_doff, zero tail lanes)
    # wb_ref : (1, n_taps + 1, W_acc)    per-tap lane weights for this c_out; last row = bias
    # o_ref  : (1, n_phase, Mh, W_acc)   phase outputs (interleaved outside)
    # xsh_ref: (max(max_doff,1), C_in, Hp, W_acc)  scratch: lane-shifted strip copies
    c_in = x_ref.shape[0]
    w_acc = o_ref.shape[-1]

    # Prologue: hoist lane realignment.  One shifted, full-width copy per distinct
    # lane offset (instead of an unaligned load per tap); all tap loads below are
    # lane-offset 0.
    for d in range(1, max_doff + 1):
        for ci in range(c_in):
            xsh_ref[d - 1, ci, :, :] = x_ref[ci, :, d:d + w_acc]

    bias = wb_ref[0, n_taps:n_taps + 1, :]                      # (1, W_acc)

    # Fully unrolled: total taps over all phases == C_in*K*K (36 here); per-phase
    # accumulator is (Mh, W_acc) f32 = 4 vregs -> no spill risk.
    for ph, taps in enumerate(phases):
        acc = jnp.broadcast_to(bias, (Mh, w_acc))               # init from bias
        for (row, ci, roff, coff) in taps:
            if coff == 0:
                slab = x_ref[ci, roff:roff + Mh, :w_acc]
            else:
                slab = xsh_ref[coff - 1, ci, roff:roff + Mh, :]
            acc = acc + wb_ref[0, row:row + 1, :] * slab
        o_ref[0, ph, :, :] = acc


# ----------------------------------------------------------------------------
# Factory: hoists ALL input-independent work (weight packing, phase schedule)
# and returns a jitted forward(x_red, x_green) mirroring the module's forward.
# ----------------------------------------------------------------------------
def make_star_shaped_forward(params, *, batch, in_hw, stride, padding, class_idx=None):
    H, W = in_hw
    s = int(stride)
    p = int(padding)

    w_red = jnp.asarray(params["w_red"], jnp.float32)
    b_red = jnp.asarray(params["b_red"], jnp.float32)
    w_green = jnp.stack([jnp.asarray(w, jnp.float32) for w in params["w_green"]])
    b_green = jnp.stack([jnp.asarray(b, jnp.float32) for b in params["b_green"]])

    n_classes = int(w_green.shape[0])
    c_in_red, c_out_red, K, _ = w_red.shape
    c_in = int(w_green.shape[1])
    c_out_green = int(w_green.shape[2])
    C_out = max(c_out_red, c_out_green)
    assert 0 <= p <= K - 1, "supported range: 0 <= padding <= kernel_size - 1"
    # TODO(synk): output_padding not supported (the module never sets it).

    # ---- branch-uniform weights: zero-pad so extra in/out channels are inert ----
    w_red_p = jnp.pad(w_red, ((0, c_in - c_in_red), (0, C_out - c_out_red), (0, 0), (0, 0)))
    b_red_p = jnp.pad(b_red, ((0, C_out - c_out_red),))
    w_green_p = jnp.pad(w_green, ((0, 0), (0, 0), (0, C_out - c_out_green), (0, 0), (0, 0)))
    b_green_p = jnp.pad(b_green, ((0, 0), (0, C_out - c_out_green)))
    if class_idx is None:
        w_all = jnp.concatenate([w_red_p[None], w_green_p], axis=0)     # (n_br, C_in, C_out, K, K)
        b_all = jnp.concatenate([b_red_p[None], b_green_p], axis=0)     # (n_br, C_out)
    else:
        w_all = jnp.stack([w_red_p, w_green_p[class_idx]], axis=0)
        b_all = jnp.stack([b_red_p, b_green_p[class_idx]], axis=0)
    n_br = int(w_all.shape[0])
    n_images = n_br * batch

    # ---- static phase schedule: output residue r -> (tap residue t, shift c, #taps J)
    OH = (H - 1) * s - 2 * p + K
    OW = (W - 1) * s - 2 * p + K
    Mh = -(-OH // s)
    Mw = -(-OW // s)
    res = []
    for r in range(s):
        t = (r + p) % s
        c = (r + p) // s
        J = max(0, (K - 1 - t) // s + 1)
        res.append((t, c, J))
    pad_top = max([0] + [(J - 1) - c for (t, c, J) in res if J > 0])
    pad_left = pad_top
    max_c = max(c for (t, c, J) in res)
    pad_bot = max(0, (Mh - 1) + max_c - (H - 1))
    pad_right = max(0, (Mw - 1) + max_c - (W - 1))
    Hp = H + pad_top + pad_bot
    Wp = W + pad_left + pad_right
    W_strip = n_images * Wp
    w_acc = _round_up(W_strip, 128)                       # lane-dense, unmasked stores
    max_doff = max([0] + [c + pad_left for (t, c, J) in res if J > 0])
    w_in = _round_up(w_acc + max_doff, 128)               # head-room for the hoisted lane shift
    n_taps = c_in * K * K
    n_phase = s * s

    phases = []
    for rh in range(s):
        th, ch, Jh = res[rh]
        for rw in range(s):
            tw, cw, Jw = res[rw]
            taps = []
            for ci in range(c_in):
                for jh in range(Jh):
                    kh = jh * s + th
                    roff = ch - jh + pad_top
                    for jw in range(Jw):
                        kw = jw * s + tw
                        coff = cw - jw + pad_left
                        taps.append((ci * K * K + kh * K + kw, ci, roff, coff))
            phases.append(tuple(taps))
    phases = tuple(phases)

    # ---- per-output-column lane weights + bias row, computed ONCE (hoisted) ----
    w_rows = jnp.transpose(w_all, (2, 1, 3, 4, 0)).reshape(C_out, n_taps, n_br)
    b_rows = jnp.transpose(b_all)[:, None, :]                             # (C_out, 1, n_br)
    rows = jnp.concatenate([w_rows, b_rows], axis=1)                      # (C_out, n_taps+1, n_br)
    wb = jnp.broadcast_to(rows[:, :, :, None], (C_out, n_taps + 1, n_br, batch * Wp))
    wb = wb.reshape(C_out, n_taps + 1, W_strip)
    wb = jnp.pad(wb, ((0, 0), (0, 0), (0, w_acc - W_strip)))
    wb = jax.block_until_ready(wb)                                        # materialize once

    kernel = functools.partial(_star_phase_kernel, phases=phases, n_taps=n_taps,
                               Mh=Mh, max_doff=max_doff)
    conv = pl.pallas_call(
        kernel,
        out_shape=jax.ShapeDtypeStruct((C_out, n_phase, Mh, w_acc), jnp.float32),
        grid=(C_out,),
        in_specs=[
            pl.BlockSpec((c_in, Hp, w_in), lambda co: (0, 0, 0)),         # constant block -> DMA'd once
            pl.BlockSpec((1, n_taps + 1, w_acc), lambda co: (co, 0, 0)),
        ],
        out_specs=pl.BlockSpec((1, n_phase, Mh, w_acc), lambda co: (co, 0, 0, 0)),
        scratch_shapes=[pltpu.VMEM((max(max_doff, 1), c_in, Hp, w_acc), jnp.float32)],
        compiler_params=pltpu.CompilerParams(dimension_semantics=("parallel",)),
    )

    @jax.jit
    def forward(x_red, x_green):
        x_red = x_red.astype(jnp.float32)
        x_green = x_green.astype(jnp.float32)
        g = x_green if class_idx is None else x_green[None]
        # Branch 0 (the red-only conv) sees zero green inputs: fold that zero branch
        # into the same pad that applies the spatial border (one op).
        g = jnp.pad(g, ((1, 0), (0, 0), (0, 0), (pad_top, pad_bot), (pad_left, pad_right)))
        r = jnp.pad(x_red, ((0, 0), (0, 0), (pad_top, pad_bot), (pad_left, pad_right)))
        r = jnp.broadcast_to(r[None], (n_br, batch, c_in_red, Hp, Wp))
        xp = jnp.concatenate([r, g], axis=2)                              # (n_br, B, C_in, Hp, Wp)
        strip = jnp.transpose(xp, (2, 3, 0, 1, 4)).reshape(c_in, Hp, W_strip)
        strip = jnp.pad(strip, ((0, 0), (0, 0), (0, w_in - W_strip)))     # zero tail lanes

        out = conv(strip, wb)                                             # (C_out, s*s, Mh, w_acc)

        # Unpack: split images, interleave parity phases (layout plumbing only).
        out = out[:, :, :, :W_strip].reshape(C_out, s, s, Mh, n_br, batch, Wp)[..., :Mw]
        out = jnp.transpose(out, (4, 5, 0, 3, 1, 6, 2))                   # (br,B,C_out,Mh,rh,Mw,rw)
        out = out.reshape(n_br, batch, C_out, Mh * s, Mw * s)[:, :, :, :OH, :OW]
        y_red = out[0, :, :c_out_red]
        if class_idx is None:
            return y_red, [out[1 + c, :, :c_out_green] for c in range(n_classes)]
        return y_red, out[1, :, :c_out_green]

    return forward


# ----------------------------------------------------------------------------
# Parameter init (mirrors the PyTorch module, use_norm=False)
# ----------------------------------------------------------------------------
def init_params(key, c_in, c_out, kernel_size, red_portion=0.5, n_classes=6):
    c_in_red = int(c_in * red_portion)
    c_out_red = int(c_out * red_portion)
    c_out_green = c_out - c_out_red
    keys = jax.random.split(key, 2 + 2 * n_classes)
    params = {
        "w_red": 0.1 * jax.random.normal(
            keys[0], (c_in_red, c_out_red, kernel_size, kernel_size), jnp.float32),
        "b_red": 0.1 * jax.random.normal(keys[1], (c_out_red,), jnp.float32),
        "w_green": [
            0.1 * jax.random.normal(
                keys[2 + 2 * i], (c_in, c_out_green, kernel_size, kernel_size), jnp.float32)
            for i in range(n_classes)
        ],
        "b_green": [
            0.1 * jax.random.normal(keys[3 + 2 * i], (c_out_green,), jnp.float32)
            for i in range(n_classes)
        ],
    }
    return params


# ----------------------------------------------------------------------------
# Pure-JAX reference (scatter formulation) for correctness checking
# ----------------------------------------------------------------------------
def conv_transpose2d_ref(x, weight, bias, *, stride, padding):
    B, C_in, H, W = x.shape
    _, C_out, K, _ = weight.shape
    Hf = (H - 1) * stride + K
    Wf = (W - 1) * stride + K
    full = jnp.zeros((B, C_out, Hf, Wf), jnp.float32)
    for kh in range(K):
        for kw in range(K):
            contrib = jnp.einsum("bihw,io->bohw", x, weight[:, :, kh, kw])
            full = full.at[:, :,
                           kh:kh + (H - 1) * stride + 1:stride,
                           kw:kw + (W - 1) * stride + 1:stride].add(contrib)
    OH = (H - 1) * stride - 2 * padding + K
    OW = (W - 1) * stride - 2 * padding + K
    out = full[:, :, padding:padding + OH, padding:padding + OW]
    return out + bias[None, :, None, None]


if __name__ == "__main__":
    B = 2
    c_in, c_out = 4, 4
    red_portion = 0.5
    kernel_size, stride, padding = 3, 2, 1
    n_classes = 6
    H = W = 16

    c_in_red = int(c_in * red_portion)          # 2
    c_in_green = c_in - c_in_red                # 2
    c_out_red = int(c_out * red_portion)        # 2
    c_out_green = c_out - c_out_red             # 2

    key = jax.random.PRNGKey(0)
    k_par, k_xr, k_xg = jax.random.split(key, 3)

    params = init_params(k_par, c_in, c_out, kernel_size,
                         red_portion=red_portion, n_classes=n_classes)

    x_red = jax.random.normal(k_xr, (B, c_in_red, H, W), jnp.float32)
    x_green = jax.random.normal(k_xg, (n_classes, B, c_in_green, H, W), jnp.float32)

    # --- class_idx=None path (red output + list of green outputs) ---
    fwd_all = make_star_shaped_forward(
        params, batch=B, in_hw=(H, W), stride=stride, padding=padding, class_idx=None)
    y_red, y_green = fwd_all(x_red, x_green)
    y_red = jax.block_until_ready(y_red)
    y_green = [jax.block_until_ready(y) for y in y_green]

    ref_red = conv_transpose2d_ref(x_red, params["w_red"], params["b_red"],
                                   stride=stride, padding=padding)
    assert y_red.shape == (B, c_out_red, 31, 31)
    assert jnp.allclose(y_red, ref_red, atol=1e-4, rtol=1e-4)
    for c in range(n_classes):
        x_in = jnp.concatenate([x_red, x_green[c]], axis=1)
        ref_g = conv_transpose2d_ref(x_in, params["w_green"][c], params["b_green"][c],
                                     stride=stride, padding=padding)
        assert jnp.allclose(y_green[c], ref_g, atol=1e-4, rtol=1e-4)

    # --- class_idx path (single green output) ---
    fwd_c3 = make_star_shaped_forward(
        params, batch=B, in_hw=(H, W), stride=stride, padding=padding, class_idx=3)
    y_red2, y_green2 = fwd_c3(x_red, x_green[3])
    y_green2 = jax.block_until_ready(y_green2)
    x_in3 = jnp.concatenate([x_red, x_green[3]], axis=1)
    ref_g3 = conv_transpose2d_ref(x_in3, params["w_green"][3], params["b_green"][3],
                                  stride=stride, padding=padding)
    assert jnp.allclose(y_red2, ref_red, atol=1e-4, rtol=1e-4)
    assert jnp.allclose(y_green2, ref_g3, atol=1e-4, rtol=1e-4)

    print("KERNEL_OK")
</pallas_src>

<mosaic_0001>
module attributes {stable_mosaic.version = 11 : i64} {
  func.func @_star_phase_kernel(%arg0: i32, %arg1: memref<4x17x384xf32, #tpu.memory_space<vmem>>, %arg2: memref<1x37x256xf32, #tpu.memory_space<vmem>>, %arg3: memref<1x4x16x256xf32, #tpu.memory_space<vmem>>, %arg4: memref<1x4x17x256xf32, #tpu.memory_space<vmem>>) attributes {dimension_semantics = [#tpu.dimension_semantics<parallel>], iteration_bounds = array<i64: 2>, scalar_prefetch = 0 : i64, scratch_operands = 1 : i64, tpu.core_type = #tpu.core_type<tc>, window_params = [{pipeline_mode = #tpu.pipeline_mode<synchronous>, transform_indices = @transform_0, window_bounds = array<i64: 4, 17, 384>}, {transform_indices = @transform_1, window_bounds = array<i64: 1, 37, 256>}, {transform_indices = @transform_2, window_bounds = array<i64: 1, 4, 16, 256>}]} {
    %c0 = arith.constant 0 : index
    %c0_0 = arith.constant 0 : index
    %c1 = arith.constant 1 : index
    %0 = vector.load %arg1[%c0, %c0_0, %c1] : memref<4x17x384xf32, #tpu.memory_space<vmem>>, vector<1x17x256xf32>
    %1 = vector.shape_cast %0 : vector<1x17x256xf32> to vector<17x256xf32>
    %c0_1 = arith.constant 0 : index
    %c0_2 = arith.constant 0 : index
    %c0_3 = arith.constant 0 : index
    %c0_4 = arith.constant 0 : index
    %2 = vector.load %arg4[%c0_1, %c0_2, %c0_3, %c0_4] : memref<1x4x17x256xf32, #tpu.memory_space<vmem>>, vector<1x1x17x256xf32>
    %3 = vector.shape_cast %2 : vector<1x1x17x256xf32> to vector<17x256xf32>
    %4 = vector.shape_cast %1 : vector<17x256xf32> to vector<1x1x17x256xf32>
    tpu.vector_store %arg4[%c0_1, %c0_2, %c0_3, %c0_4], %4 {strides = array<i32>} : memref<1x4x17x256xf32, #tpu.memory_space<vmem>>, vector<1x1x17x256xf32>,
    %c1_5 = arith.constant 1 : index
    %c0_6 = arith.constant 0 : index
    %c1_7 = arith.constant 1 : index
    %5 = vector.load %arg1[%c1_5, %c0_6, %c1_7] : memref<4x17x384xf32, #tpu.memory_space<vmem>>, vector<1x17x256xf32>
    %6 = vector.shape_cast %5 : vector<1x17x256xf32> to vector<17x256xf32>
    %c0_8 = arith.constant 0 : index
    %c1_9 = arith.constant 1 : index
    %c0_10 = arith.constant 0 : index
    %c0_11 = arith.constant 0 : index
    %7 = vector.load %arg4[%c0_8, %c1_9, %c0_10, %c0_11] : memref<1x4x17x256xf32, #tpu.memory_space<vmem>>, vector<1x1x17x256xf32>
    %8 = vector.shape_cast %7 : vector<1x1x17x256xf32> to vector<17x256xf32>
    %9 = vector.shape_cast %6 : vector<17x256xf32> to vector<1x1x17x256xf32>
    tpu.vector_store %arg4[%c0_8, %c1_9, %c0_10, %c0_11], %9 {strides = array<i32>} : memref<1x4x17x256xf32, #tpu.memory_space<vmem>>, vector<1x1x17x256xf32>,
    %c2 = arith.constant 2 : index
    %c0_12 = arith.constant 0 : index
    %c1_13 = arith.constant 1 : index
    %10 = vector.load %arg1[%c2, %c0_12, %c1_13] : memref<4x17x384xf32, #tpu.memory_space<vmem>>, vector<1x17x256xf32>
    %11 = vector.shape_cast %10 : vector<1x17x256xf32> to vector<17x256xf32>
    %c0_14 = arith.constant 0 : index
    %c2_15 = arith.constant 2 : index
    %c0_16 = arith.constant 0 : index
    %c0_17 = arith.constant 0 : index
    %12 = vector.load %arg4[%c0_14, %c2_15, %c0_16, %c0_17] : memref<1x4x17x256xf32, #tpu.memory_space<vmem>>, vector<1x1x17x256xf32>
    %13 = vector.shape_cast %12 : vector<1x1x17x256xf32> to vector<17x256xf32>
    %14 = vector.shape_cast %11 : vector<17x256xf32> to vector<1x1x17x256xf32>
    tpu.vector_store %arg4[%c0_14, %c2_15, %c0_16, %c0_17], %14 {strides = array<i32>} : memref<1x4x17x256xf32, #tpu.memory_space<vmem>>, vector<1x1x17x256xf32>,
    %c3 = arith.constant 3 : index
    %c0_18 = arith.constant 0 : index
    %c1_19 = arith.constant 1 : index
    %15 = vector.load %arg1[%c3, %c0_18, %c1_19] : memref<4x17x384xf32, #tpu.memory_space<vmem>>, vector<1x17x256xf32>
    %16 = vector.shape_cast %15 : vector<1x17x256xf32> to vector<17x256xf32>
    %c0_20 = arith.constant 0 : index
    %c3_21 = arith.constant 3 : index
    %c0_22 = arith.constant 0 : index
    %c0_23 = arith.constant 0 : index
    %17 = vector.load %arg4[%c0_20, %c3_21, %c0_22, %c0_23] : memref<1x4x17x256xf32, #tpu.memory_space<vmem>>, vector<1x1x17x256xf32>
    %18 = vector.shape_cast %17 : vector<1x1x17x256xf32> to vector<17x256xf32>
    %19 = vector.shape_cast %16 : vector<17x256xf32> to vector<1x1x17x256xf32>
    tpu.vector_store %arg4[%c0_20, %c3_21, %c0_22, %c0_23], %19 {strides = array<i32>} : memref<1x4x17x256xf32, #tpu.memory_space<vmem>>, vector<1x1x17x256xf32>,
    %c0_24 = arith.constant 0 : index
    %c36 = arith.constant 36 : index
    %c0_25 = arith.constant 0 : index
    %20 = vector.load %arg2[%c0_24, %c36, %c0_25] : memref<1x37x256xf32, #tpu.memory_space<vmem>>, vector<1x1x256xf32>
    %21 = vector.shape_cast %20 : vector<1x1x256xf32> to vector<1x256xf32>
    %22 = vector.shape_cast %21 : vector<1x256xf32> to vector<1x256xf32>
    %23 = vector.broadcast %22 : vector<1x256xf32> to vector<16x256xf32>
    %c0_26 = arith.constant 0 : index
    %c0_27 = arith.constant 0 : index
    %c0_28 = arith.constant 0 : index
    %24 = vector.load %arg1[%c0_26, %c0_27, %c0_28] : memref<4x17x384xf32, #tpu.memory_space<vmem>>, vector<1x16x256xf32>
    %25 = vector.shape_cast %24 : vector<1x16x256xf32> to vector<16x256xf32>
    %c0_29 = arith.constant 0 : index
    %c4 = arith.constant 4 : index
    %c0_30 = arith.constant 0 : index
    %26 = vector.load %arg2[%c0_29, %c4, %c0_30] : memref<1x37x256xf32, #tpu.memory_space<vmem>>, vector<1x1x256xf32>
    %27 = vector.shape_cast %26 : vector<1x1x256xf32> to vector<1x256xf32>
    %28 = vector.broadcast %27 : vector<1x256xf32> to vector<16x256xf32>
    %29 = arith.mulf %28, %25 : vector<16x256xf32>
    %30 = arith.addf %23, %29 : vector<16x256xf32>
    %c1_31 = arith.constant 1 : index
    %c0_32 = arith.constant 0 : index
    %c0_33 = arith.constant 0 : index
    %31 = vector.load %arg1[%c1_31, %c0_32, %c0_33] : memref<4x17x384xf32, #tpu.memory_space<vmem>>, vector<1x16x256xf32>
    %32 = vector.shape_cast %31 : vector<1x16x256xf32> to vector<16x256xf32>
    %c0_34 = arith.constant 0 : index
    %c13 = arith.constant 13 : index
    %c0_35 = arith.constant 0 : index
    %33 = vector.load %arg2[%c0_34, %c13, %c0_35] : memref<1x37x256xf32, #tpu.memory_space<vmem>>, vector<1x1x256xf32>
    %34 = vector.shape_cast %33 : vector<1x1x256xf32> to vector<1x256xf32>
    %35 = vector.broadcast %34 : vector<1x256xf32> to vector<16x256xf32>
    %36 = arith.mulf %35, %32 : vector<16x256xf32>
    %37 = arith.addf %30, %36 : vector<16x256xf32>
    %c2_36 = arith.constant 2 : index
    %c0_37 = arith.constant 0 : index
    %c0_38 = arith.constant 0 : index
    %38 = vector.load %arg1[%c2_36, %c0_37, %c0_38] : memref<4x17x384xf32, #tpu.memory_space<vmem>>, vector<1x16x256xf32>
    %39 = vector.shape_cast %38 : vector<1x16x256xf32> to vector<16x256xf32>
    %c0_39 = arith.constant 0 : index
    %c22 = arith.constant 22 : index
    %c0_40 = arith.constant 0 : index
    %40 = vector.load %arg2[%c0_39, %c22, %c0_40] : memref<1x37x256xf32, #tpu.memory_space<vmem>>, vector<1x1x256xf32>
    %41 = vector.shape_cast %40 : vector<1x1x256xf32> to vector<1x256xf32>
    %42 = vector.broadcast %41 : vector<1x256xf32> to vector<16x256xf32>
    %43 = arith.mulf %42, %39 : vector<16x256xf32>
    %44 = arith.addf %37, %43 : vector<16x256xf32>
    %c3_41 = arith.constant 3 : index
    %c0_42 = arith.constant 0 : index
    %c0_43 = arith.constant 0 : index
    %45 = vector.load %arg1[%c3_41, %c0_42, %c0_43] : memref<4x17x384xf32, #tpu.memory_space<vmem>>, vector<1x16x256xf32>
    %46 = vector.shape_cast %45 : vector<1x16x256xf32> to vector<16x256xf32>
    %c0_44 = arith.constant 0 : index
    %c31 = arith.constant 31 : index
    %c0_45 = arith.constant 0 : index
    %47 = vector.load %arg2[%c0_44, %c31, %c0_45] : memref<1x37x256xf32, #tpu.memory_space<vmem>>, vector<1x1x256xf32>
    %48 = vector.shape_cast %47 : vector<1x1x256xf32> to vector<1x256xf32>
    %49 = vector.broadcast %48 : vector<1x256xf32> to vector<16x256xf32>
    %50 = arith.mulf %49, %46 : vector<16x256xf32>
    %51 = arith.addf %44, %50 : vector<16x256xf32>
    %c0_46 = arith.constant 0 : index
    %c0_47 = arith.constant 0 : index
    %c0_48 = arith.constant 0 : index
    %c0_49 = arith.constant 0 : index
    %52 = vector.load %arg3[%c0_46, %c0_47, %c0_48, %c0_49] : memref<1x4x16x256xf32, #tpu.memory_space<vmem>>, vector<1x1x16x256xf32>
    %53 = vector.shape_cast %52 : vector<1x1x16x256xf32> to vector<16x256xf32>
    %54 = vector.shape_cast %51 : vector<16x256xf32> to vector<1x1x16x256xf32>
    tpu.vector_store %arg3[%c0_46, %c0_47, %c0_48, %c0_49], %54 {strides = array<i32>} : memref<1x4x16x256xf32, #tpu.memory_space<vmem>>, vector<1x1x16x256xf32>,
    %55 = vector.shape_cast %21 : vector<1x256xf32> to vector<1x256xf32>
    %56 = vector.broadcast %55 : vector<1x256xf32> to vector<16x256xf32>
    %c0_50 = arith.constant 0 : index
    %c0_51 = arith.constant 0 : index
    %c0_52 = arith.constant 0 : index
    %c0_53 = arith.constant 0 : index
    %57 = vector.load %arg4[%c0_50, %c0_51, %c0_52, %c0_53] : memref<1x4x17x256xf32, #tpu.memory_space<vmem>>, vector<1x1x16x256xf32>
    %58 = vector.shape_cast %57 : vector<1x1x16x256xf32> to vector<16x256xf32>
    %c0_54 = arith.constant 0 : index
    %c3_55 = arith.constant 3 : index
    %c0_56 = arith.constant 0 : index
    %59 = vector.load %arg2[%c0_54, %c3_55, %c0_56] : memref<1x37x256xf32, #tpu.memory_space<vmem>>, vector<1x1x256xf32>
    %60 = vector.shape_cast %59 : vector<1x1x256xf32> to vector<1x256xf32>
    %61 = vector.broadcast %60 : vector<1x256xf32> to vector<16x256xf32>
    %62 = arith.mulf %61, %58 : vector<16x256xf32>
    %63 = arith.addf %56, %62 : vector<16x256xf32>
    %c0_57 = arith.constant 0 : index
    %c0_58 = arith.constant 0 : index
    %c0_59 = arith.constant 0 : index
    %64 = vector.load %arg1[%c0_57, %c0_58, %c0_59] : memref<4x17x384xf32, #tpu.memory_space<vmem>>, vector<1x16x256xf32>
    %65 = vector.shape_cast %64 : vector<1x16x256xf32> to vector<16x256xf32>
    %c0_60 = arith.constant 0 : index
    %c5 = arith.constant 5 : index
    %c0_61 = arith.constant 0 : index
    %66 = vector.load %arg2[%c0_60, %c5, %c0_61] : memref<1x37x256xf32, #tpu.memory_space<vmem>>, vector<1x1x256xf32>
    %67 = vector.shape_cast %66 : vector<1x1x256xf32> to vector<1x256xf32>
    %68 = vector.broadcast %67 : vector<1x256xf32> to vector<16x256xf32>
    %69 = arith.mulf %68, %65 : vector<16x256xf32>
    %70 = arith.addf %63, %69 : vector<16x256xf32>
    %c0_62 = arith.constant 0 : index
    %c1_63 = arith.constant 1 : index
    %c0_64 = arith.constant 0 : index
    %c0_65 = arith.constant 0 : index
    %71 = vector.load %arg4[%c0_62, %c1_63, %c0_64, %c0_65] : memref<1x4x17x256xf32, #tpu.memory_space<vmem>>, vector<1x1x16x256xf32>
    %72 = vector.shape_cast %71 : vector<1x1x16x256xf32> to vector<16x256xf32>
    %c0_66 = arith.constant 0 : index
    %c12 = arith.constant 12 : index
    %c0_67 = arith.constant 0 : index
    %73 = vector.load %arg2[%c0_66, %c12, %c0_67] : memref<1x37x256xf32, #tpu.memory_space<vmem>>, vector<1x1x256xf32>
    %74 = vector.shape_cast %73 : vector<1x1x256xf32> to vector<1x256xf32>
    %75 = vector.broadcast %74 : vector<1x256xf32> to vector<16x256xf32>
    %76 = arith.mulf %75, %72 : vector<16x256xf32>
    %77 = arith.addf %70, %76 : vector<16x256xf32>
    %c1_68 = arith.constant 1 : index
    %c0_69 = arith.constant 0 : index
    %c0_70 = arith.constant 0 : index
    %78 = vector.load %arg1[%c1_68, %c0_69, %c0_70] : memref<4x17x384xf32, #tpu.memory_space<vmem>>, vector<1x16x256xf32>
    %79 = vector.shape_cast %78 : vector<1x16x256xf32> to vector<16x256xf32>
    %c0_71 = arith.constant 0 : index
    %c14 = arith.constant 14 : index
    %c0_72 = arith.constant 0 : index
    %80 = vector.load %arg2[%c0_71, %c14, %c0_72] : memref<1x37x256xf32, #tpu.memory_space<vmem>>, vector<1x1x256xf32>
    %81 = vector.shape_cast %80 : vector<1x1x256xf32> to vector<1x256xf32>
    %82 = vector.broadcast %81 : vector<1x256xf32> to vector<16x256xf32>
    %83 = arith.mulf %82, %79 : vector<16x256xf32>
    %84 = arith.addf %77, %83 : vector<16x256xf32>
    %c0_73 = arith.constant 0 : index
    %c2_74 = arith.constant 2 : index
    %c0_75 = arith.constant 0 : index
    %c0_76 = arith.constant 0 : index
    %85 = vector.load %arg4[%c0_73, %c2_74, %c0_75, %c0_76] : memref<1x4x17x256xf32, #tpu.memory_space<vmem>>, vector<1x1x16x256xf32>
    %86 = vector.shape_cast %85 : vector<1x1x16x256xf32> to vector<16x256xf32>
    %c0_77 = arith.constant 0 : index
    %c21 = arith.constant 21 : index
    %c0_78 = arith.constant 0 : index
    %87 = vector.load %arg2[%c0_77, %c21, %c0_78] : memref<1x37x256xf32, #tpu.memory_space<vmem>>, vector<1x1x256xf32>
    %88 = vector.shape_cast %87 : vector<1x1x256xf32> to vector<1x256xf32>
    %89 = vector.broadcast %88 : vector<1x256xf32> to vector<16x256xf32>
    %90 = arith.mulf %89, %86 : vector<16x256xf32>
    %91 = arith.addf %84, %90 : vector<16x256xf32>
    %c2_79 = arith.constant 2 : index
    %c0_80 = arith.constant 0 : index
    %c0_81 = arith.constant 0 : index
    %92 = vector.load %arg1[%c2_79, %c0_80, %c0_81] : memref<4x17x384xf32, #tpu.memory_space<vmem>>, vector<1x16x256xf32>
    %93 = vector.shape_cast %92 : vector<1x16x256xf32> to vector<16x256xf32>
    %c0_82 = arith.constant 0 : index
    %c23 = arith.constant 23 : index
    %c0_83 = arith.constant 0 : index
    %94 = vector.load %arg2[%c0_82, %c23, %c0_83] : memref<1x37x256xf32, #tpu.memory_space<vmem>>, vector<1x1x256xf32>
    %95 = vector.shape_cast %94 : vector<1x1x256xf32> to vector<1x256xf32>
    %96 = vector.broadcast %95 : vector<1x256xf32> to vector<16x256xf32>
    %97 = arith.mulf %96, %93 : vector<16x256xf32>
    %98 = arith.addf %91, %97 : vector<16x256xf32>
    %c0_84 = arith.constant 0 : index
    %c3_85 = arith.constant 3 : index
    %c0_86 = arith.constant 0 : index
    %c0_87 = arith.constant 0 : index
    %99 = vector.load %arg4[%c0_84, %c3_85, %c0_86, %c0_87] : memref<1x4x17x256xf32, #tpu.memory_space<vmem>>, vector<1x1x16x256xf32>
    %100 = vector.shape_cast %99 : vector<1x1x16x256xf32> to vector<16x256xf32>
    %c0_88 = arith.constant 0 : index
    %c30 = arith.constant 30 : index
    %c0_89 = arith.constant 0 : index
    %101 = vector.load %arg2[%c0_88, %c30, %c0_89] : memref<1x37x256xf32, #tpu.memory_space<vmem>>, vector<1x1x256xf32>
    %102 = vector.shape_cast %101 : vector<1x1x256xf32> to vector<1x256xf32>
    %103 = vector.broadcast %102 : vector<1x256xf32> to vector<16x256xf32>
    %104 = arith.mulf %103, %100 : vector<16x256xf32>
    %105 = arith.addf %98, %104 : vector<16x256xf32>
    %c3_90 = arith.constant 3 : index
    %c0_91 = arith.constant 0 : index
    %c0_92 = arith.constant 0 : index
    %106 = vector.load %arg1[%c3_90, %c0_91, %c0_92] : memref<4x17x384xf32, #tpu.memory_space<vmem>>, vector<1x16x256xf32>
    %107 = vector.shape_cast %106 : vector<1x16x256xf32> to vector<16x256xf32>
    %c0_93 = arith.constant 0 : index
    %c32 = arith.constant 32 : index
    %c0_94 = arith.constant 0 : index
    %108 = vector.load %arg2[%c0_93, %c32, %c0_94] : memref<1x37x256xf32, #tpu.memory_space<vmem>>, vector<1x1x256xf32>
    %109 = vector.shape_cast %108 : vector<1x1x256xf32> to vector<1x256xf32>
    %110 = vector.broadcast %109 : vector<1x256xf32> to vector<16x256xf32>
    %111 = arith.mulf %110, %107 : vector<16x256xf32>
    %112 = arith.addf %105, %111 : vector<16x256xf32>
    %c0_95 = arith.constant 0 : index
    %c1_96 = arith.constant 1 : index
    %c0_97 = arith.constant 0 : index
    %c0_98 = arith.constant 0 : index
    %113 = vector.load %arg3[%c0_95, %c1_96, %c0_97, %c0_98] : memref<1x4x16x256xf32, #tpu.memory_space<vmem>>, vector<1x1x16x256xf32>
    %114 = vector.shape_cast %113 : vector<1x1x16x256xf32> to vector<16x256xf32>
    %115 = vector.shape_cast %112 : vector<16x256xf32> to vector<1x1x16x256xf32>
    tpu.vector_store %arg3[%c0_95, %c1_96, %c0_97, %c0_98], %115 {strides = array<i32>} : memref<1x4x16x256xf32, #tpu.memory_space<vmem>>, vector<1x1x16x256xf32>,
    %116 = vector.shape_cast %21 : vector<1x256xf32> to vector<1x256xf32>
    %117 = vector.broadcast %116 : vector<1x256xf32> to vector<16x256xf32>
    %c0_99 = arith.constant 0 : index
    %c1_100 = arith.constant 1 : index
    %c0_101 = arith.constant 0 : index
    %118 = vector.load %arg1[%c0_99, %c1_100, %c0_101] : memref<4x17x384xf32, #tpu.memory_space<vmem>>, vector<1x16x256xf32>
    %119 = vector.shape_cast %118 : vector<1x16x256xf32> to vector<16x256xf32>
    %c0_102 = arith.constant 0 : index
    %c1_103 = arith.constant 1 : index
    %c0_104 = arith.constant 0 : index
    %120 = vector.load %arg2[%c0_102, %c1_103, %c0_104] : memref<1x37x256xf32, #tpu.memory_space<vmem>>, vector<1x1x256xf32>
    %121 = vector.shape_cast %120 : vector<1x1x256xf32> to vector<1x256xf32>
    %122 = vector.broadcast %121 : vector<1x256xf32> to vector<16x256xf32>
    %123 = arith.mulf %122, %119 : vector<16x256xf32>
    %124 = arith.addf %117, %123 : vector<16x256xf32>
    %c0_105 = arith.constant 0 : index
    %c0_106 = arith.constant 0 : index
    %c0_107 = arith.constant 0 : index
    %125 = vector.load %arg1[%c0_105, %c0_106, %c0_107] : memref<4x17x384xf32, #tpu.memory_space<vmem>>, vector<1x16x256xf32>
    %126 = vector.shape_cast %125 : vector<1x16x256xf32> to vector<16x256xf32>
    %c0_108 = arith.constant 0 : index
    %c7 = arith.constant 7 : index
    %c0_109 = arith.constant 0 : index
    %127 = vector.load %arg2[%c0_108, %c7, %c0_109] : memref<1x37x256xf32, #tpu.memory_space<vmem>>, vector<1x1x256xf32>
    %128 = vector.shape_cast %127 : vector<1x1x256xf32> to vector<1x256xf32>
    %129 = vector.broadcast %128 : vector<1x256xf32> to vector<16x256xf32>
    %130 = arith.mulf %129, %126 : vector<16x256xf32>
    %131 = arith.addf %124, %130 : vector<16x256xf32>
    %c1_110 = arith.constant 1 : index
    %c1_111 = arith.constant 1 : index
    %c0_112 = arith.constant 0 : index
    %132 = vector.load %arg1[%c1_110, %c1_111, %c0_112] : memref<4x17x384xf32, #tpu.memory_space<vmem>>, vector<1x16x256xf32>
    %133 = vector.shape_cast %132 : vector<1x16x256xf32> to vector<16x256xf32>
    %c0_113 = arith.constant 0 : index
    %c10 = arith.constant 10 : index
    %c0_114 = arith.constant 0 : index
    %134 = vector.load %arg2[%c0_113, %c10, %c0_114] : memref<1x37x256xf32, #tpu.memory_space<vmem>>, vector<1x1x256xf32>
    %135 = vector.shape_cast %134 : vector<1x1x256xf32> to vector<1x256xf32>
    %136 = vector.broadcast %135 : vector<1x256xf32> to vector<16x256xf32>
    %137 = arith.mulf %136, %133 : vector<16x256xf32>
    %138 = arith.addf %131, %137 : vector<16x256xf32>
    %c1_115 = arith.constant 1 : index
    %c0_116 = arith.constant 0 : index
    %c0_117 = arith.constant 0 : index
    %139 = vector.load %arg1[%c1_115, %c0_116, %c0_117] : memref<4x17x384xf32, #tpu.memory_space<vmem>>, vector<1x16x256xf32>
    %140 = vector.shape_cast %139 : vector<1x16x256xf32> to vector<16x256xf32>
    %c0_118 = arith.constant 0 : index
    %c16 = arith.constant 16 : index
    %c0_119 = arith.constant 0 : index
    %141 = vector.load %arg2[%c0_118, %c16, %c0_119] : memref<1x37x256xf32, #tpu.memory_space<vmem>>, vector<1x1x256xf32>
    %142 = vector.shape_cast %141 : vector<1x1x256xf32> to vector<1x256xf32>
    %143 = vector.broadcast %142 : vector<1x256xf32> to vector<16x256xf32>
    %144 = arith.mulf %143, %140 : vector<16x256xf32>
    %145 = arith.addf %138, %144 : vector<16x256xf32>
    %c2_120 = arith.constant 2 : index
    %c1_121 = arith.constant 1 : index
    %c0_122 = arith.constant 0 : index
    %146 = vector.load %arg1[%c2_120, %c1_121, %c0_122] : memref<4x17x384xf32, #tpu.memory_space<vmem>>, vector<1x16x256xf32>
    %147 = vector.shape_cast %146 : vector<1x16x256xf32> to vector<16x256xf32>
    %c0_123 = arith.constant 0 : index
    %c19 = arith.constant 19 : index
    %c0_124 = arith.constant 0 : index
    %148 = vector.load %arg2[%c0_123, %c19, %c0_124] : memref<1x37x256xf32, #tpu.memory_space<vmem>>, vector<1x1x256xf32>
    %149 = vector.shape_cast %148 : vector<1x1x256xf32> to vector<1x256xf32>
    %150 = vector.broadcast %149 : vector<1x256xf32> to vector<16x256xf32>
    %151 = arith.mulf %150, %147 : vector<16x256xf32>
    %152 = arith.addf %145, %151 : vector<16x256xf32>
    %c2_125 = arith.constant 2 : index
    %c0_126 = arith.constant 0 : index
    %c0_127 = arith.constant 0 : index
    %153 = vector.load %arg1[%c2_125, %c0_126, %c0_127] : memref<4x17x384xf32, #tpu.memory_space<vmem>>, vector<1x16x256xf32>
    %154 = vector.shape_cast %153 : vector<1x16x256xf32> to vector<16x256xf32>
    %c0_128 = arith.constant 0 : index
    %c25 = arith.constant 25 : index
    %c0_129 = arith.constant 0 : index
    %155 = vector.load %arg2[%c0_128, %c25, %c0_129] : memref<1x37x256xf32, #tpu.memory_space<vmem>>, vector<1x1x256xf32>
    %156 = vector.shape_cast %155 : vector<1x1x256xf32> to vector<1x256xf32>
    %157 = vector.broadcast %156 : vector<1x256xf32> to vector<16x256xf32>
    %158 = arith.mulf %157, %154 : vector<16x256xf32>
    %159 = arith.addf %152, %158 : vector<16x256xf32>
    %c3_130 = arith.constant 3 : index
    %c1_131 = arith.constant 1 : index
    %c0_132 = arith.constant 0 : index
    %160 = vector.load %arg1[%c3_130, %c1_131, %c0_132] : memref<4x17x384xf32, #tpu.memory_space<vmem>>, vector<1x16x256xf32>
    %161 = vector.shape_cast %160 : vector<1x16x256xf32> to vector<16x256xf32>
    %c0_133 = arith.constant 0 : index
    %c28 = arith.constant 28 : index
    %c0_134 = arith.constant 0 : index
    %162 = vector.load %arg2[%c0_133, %c28, %c0_134] : memref<1x37x256xf32, #tpu.memory_space<vmem>>, vector<1x1x256xf32>
    %163 = vector.shape_cast %162 : vector<1x1x256xf32> to vector<1x256xf32>
    %164 = vector.broadcast %163 : vector<1x256xf32> to vector<16x256xf32>
    %165 = arith.mulf %164, %161 : vector<16x256xf32>
    %166 = arith.addf %159, %165 : vector<16x256xf32>
    %c3_135 = arith.constant 3 : index
    %c0_136 = arith.constant 0 : index
    %c0_137 = arith.constant 0 : index
    %167 = vector.load %arg1[%c3_135, %c0_136, %c0_137] : memref<4x17x384xf32, #tpu.memory_space<vmem>>, vector<1x16x256xf32>
    %168 = vector.shape_cast %167 : vector<1x16x256xf32> to vector<16x256xf32>
    %c0_138 = arith.constant 0 : index
    %c34 = arith.constant 34 : index
    %c0_139 = arith.constant 0 : index
    %169 = vector.load %arg2[%c0_138, %c34, %c0_139] : memref<1x37x256xf32, #tpu.memory_space<vmem>>, vector<1x1x256xf32>
    %170 = vector.shape_cast %169 : vector<1x1x256xf32> to vector<1x256xf32>
    %171 = vector.broadcast %170 : vector<1x256xf32> to vector<16x256xf32>
    %172 = arith.mulf %171, %168 : vector<16x256xf32>
    %173 = arith.addf %166, %172 : vector<16x256xf32>
    %c0_140 = arith.constant 0 : index
    %c2_141 = arith.constant 2 : index
    %c0_142 = arith.constant 0 : index
    %c0_143 = arith.constant 0 : index
    %174 = vector.load %arg3[%c0_140, %c2_141, %c0_142, %c0_143] : memref<1x4x16x256xf32, #tpu.memory_space<vmem>>, vector<1x1x16x256xf32>
    %175 = vector.shape_cast %174 : vector<1x1x16x256xf32> to vector<16x256xf32>
    %176 = vector.shape_cast %173 : vector<16x256xf32> to vector<1x1x16x256xf32>
    tpu.vector_store %arg3[%c0_140, %c2_141, %c0_142, %c0_143], %176 {strides = array<i32>} : memref<1x4x16x256xf32, #tpu.memory_space<vmem>>, vector<1x1x16x256xf32>,
    %177 = vector.shape_cast %21 : vector<1x256xf32> to vector<1x256xf32>
    %178 = vector.broadcast %177 : vector<1x256xf32> to vector<16x256xf32>
    %c0_144 = arith.constant 0 : index
    %c0_145 = arith.constant 0 : index
    %c1_146 = arith.constant 1 : index
    %c0_147 = arith.constant 0 : index
    %179 = vector.load %arg4[%c0_144, %c0_145, %c1_146, %c0_147] : memref<1x4x17x256xf32, #tpu.memory_space<vmem>>, vector<1x1x16x256xf32>
    %180 = vector.shape_cast %179 : vector<1x1x16x256xf32> to vector<16x256xf32>
    %c0_148 = arith.constant 0 : index
    %c0_149 = arith.constant 0 : index
    %c0_150 = arith.constant 0 : index
    %181 = vector.load %arg2[%c0_148, %c0_149, %c0_150] : memref<1x37x256xf32, #tpu.memory_space<vmem>>, vector<1x1x256xf32>
    %182 = vector.shape_cast %181 : vector<1x1x256xf32> to vector<1x256xf32>
    %183 = vector.broadcast %182 : vector<1x256xf32> to vector<16x256xf32>
    %184 = arith.mulf %183, %180 : vector<16x256xf32>
    %185 = arith.addf %178, %184 : vector<16x256xf32>
    %c0_151 = arith.constant 0 : index
    %c1_152 = arith.constant 1 : index
    %c0_153 = arith.constant 0 : index
    %186 = vector.load %arg1[%c0_151, %c1_152, %c0_153] : memref<4x17x384xf32, #tpu.memory_space<vmem>>, vector<1x16x256xf32>
    %187 = vector.shape_cast %186 : vector<1x16x256xf32> to vector<16x256xf32>
    %c0_154 = arith.constant 0 : index
    %c2_155 = arith.constant 2 : index
    %c0_156 = arith.constant 0 : index
    %188 = vector.load %arg2[%c0_154, %c2_155, %c0_156] : memref<1x37x256xf32, #tpu.memory_space<vmem>>, vector<1x1x256xf32>
    %189 = vector.shape_cast %188 : vector<1x1x256xf32> to vector<1x256xf32>
    %190 = vector.broadcast %189 : vector<1x256xf32> to vector<16x256xf32>
    %191 = arith.mulf %190, %187 : vector<16x256xf32>
    %192 = arith.addf %185, %191 : vector<16x256xf32>
    %c0_157 = arith.constant 0 : index
    %c0_158 = arith.constant 0 : index
    %c0_159 = arith.constant 0 : index
    %c0_160 = arith.constant 0 : index
    %193 = vector.load %arg4[%c0_157, %c0_158, %c0_159, %c0_160] : memref<1x4x17x256xf32, #tpu.memory_space<vmem>>, vector<1x1x16x256xf32>
    %194 = vector.shape_cast %193 : vector<1x1x16x256xf32> to vector<16x256xf32>
    %c0_161 = arith.constant 0 : index
    %c6 = arith.constant 6 : index
    %c0_162 = arith.constant 0 : index
    %195 = vector.load %arg2[%c0_161, %c6, %c0_162] : memref<1x37x256xf32, #tpu.memory_space<vmem>>, vector<1x1x256xf32>
    %196 = vector.shape_cast %195 : vector<1x1x256xf32> to vector<1x256xf32>
    %197 = vector.broadcast %196 : vector<1x256xf32> to vector<16x256xf32>
    %198 = arith.mulf %197, %194 : vector<16x256xf32>
    %199 = arith.addf %192, %198 : vector<16x256xf32>
    %c0_163 = arith.constant 0 : index
    %c0_164 = arith.constant 0 : index
    %c0_165 = arith.constant 0 : index
    %200 = vector.load %arg1[%c0_163, %c0_164, %c0_165] : memref<4x17x384xf32, #tpu.memory_space<vmem>>, vector<1x16x256xf32>
    %201 = vector.shape_cast %200 : vector<1x16x256xf32> to vector<16x256xf32>
    %c0_166 = arith.constant 0 : index
    %c8 = arith.constant 8 : index
    %c0_167 = arith.constant 0 : index
    %202 = vector.load %arg2[%c0_166, %c8, %c0_167] : memref<1x37x256xf32, #tpu.memory_space<vmem>>, vector<1x1x256xf32>
    %203 = vector.shape_cast %202 : vector<1x1x256xf32> to vector<1x256xf32>
    %204 = vector.broadcast %203 : vector<1x256xf32> to vector<16x256xf32>
    %205 = arith.mulf %204, %201 : vector<16x256xf32>
    %206 = arith.addf %199, %205 : vector<16x256xf32>
    %c0_168 = arith.constant 0 : index
    %c1_169 = arith.constant 1 : index
    %c1_170 = arith.constant 1 : index
    %c0_171 = arith.constant 0 : index
    %207 = vector.load %arg4[%c0_168, %c1_169, %c1_170, %c0_171] : memref<1x4x17x256xf32, #tpu.memory_space<vmem>>, vector<1x1x16x256xf32>
    %208 = vector.shape_cast %207 : vector<1x1x16x256xf32> to vector<16x256xf32>
    %c0_172 = arith.constant 0 : index
    %c9 = arith.constant 9 : index
    %c0_173 = arith.constant 0 : index
    %209 = vector.load %arg2[%c0_172, %c9, %c0_173] : memref<1x37x256xf32, #tpu.memory_space<vmem>>, vector<1x1x256xf32>
    %210 = vector.shape_cast %209 : vector<1x1x256xf32> to vector<1x256xf32>
    %211 = vector.broadcast %210 : vector<1x256xf32> to vector<16x256xf32>
    %212 = arith.mulf %211, %208 : vector<16x256xf32>
    %213 = arith.addf %206, %212 : vector<16x256xf32>
    %c1_174 = arith.constant 1 : index
    %c1_175 = arith.constant 1 : index
    %c0_176 = arith.constant 0 : index
    %214 = vector.load %arg1[%c1_174, %c1_175, %c0_176] : memref<4x17x384xf32, #tpu.memory_space<vmem>>, vector<1x16x256xf32>
    %215 = vector.shape_cast %214 : vector<1x16x256xf32> to vector<16x256xf32>
    %c0_177 = arith.constant 0 : index
    %c11 = arith.constant 11 : index
    %c0_178 = arith.constant 0 : index
    %216 = vector.load %arg2[%c0_177, %c11, %c0_178] : memref<1x37x256xf32, #tpu.memory_space<vmem>>, vector<1x1x256xf32>
    %217 = vector.shape_cast %216 : vector<1x1x256xf32> to vector<1x256xf32>
    %218 = vector.broadcast %217 : vector<1x256xf32> to vector<16x256xf32>
    %219 = arith.mulf %218, %215 : vector<16x256xf32>
    %220 = arith.addf %213, %219 : vector<16x256xf32>
    %c0_179 = arith.constant 0 : index
    %c1_180 = arith.constant 1 : index
    %c0_181 = arith.constant 0 : index
    %c0_182 = arith.constant 0 : index
    %221 = vector.load %arg4[%c0_179, %c1_180, %c0_181, %c0_182] : memref<1x4x17x256xf32, #tpu.memory_space<vmem>>, vector<1x1x16x256xf32>
    %222 = vector.shape_cast %221 : vector<1x1x16x256xf32> to vector<16x256xf32>
    %c0_183 = arith.constant 0 : index
    %c15 = arith.constant 15 : index
    %c0_184 = arith.constant 0 : index
    %223 = vector.load %arg2[%c0_183, %c15, %c0_184] : memref<1x37x256xf32, #tpu.memory_space<vmem>>, vector<1x1x256xf32>
    %224 = vector.shape_cast %223 : vector<1x1x256xf32> to vector<1x256xf32>
    %225 = vector.broadcast %224 : vector<1x256xf32> to vector<16x256xf32>
    %226 = arith.mulf %225, %222 : vector<16x256xf32>
    %227 = arith.addf %220, %226 : vector<16x256xf32>
    %c1_185 = arith.constant 1 : index
    %c0_186 = arith.constant 0 : index
    %c0_187 = arith.constant 0 : index
    %228 = vector.load %arg1[%c1_185, %c0_186, %c0_187] : memref<4x17x384xf32, #tpu.memory_space<vmem>>, vector<1x16x256xf32>
    %229 = vector.shape_cast %228 : vector<1x16x256xf32> to vector<16x256xf32>
    %c0_188 = arith.constant 0 : index
    %c17 = arith.constant 17 : index
    %c0_189 = arith.constant 0 : index
    %230 = vector.load %arg2[%c0_188, %c17, %c0_189] : memref<1x37x256xf32, #tpu.memory_space<vmem>>, vector<1x1x256xf32>
    %231 = vector.shape_cast %230 : vector<1x1x256xf32> to vector<1x256xf32>
    %232 = vector.broadcast %231 : vector<1x256xf32> to vector<16x256xf32>
    %233 = arith.mulf %232, %229 : vector<16x256xf32>
    %234 = arith.addf %227, %233 : vector<16x256xf32>
    %c0_190 = arith.constant 0 : index
    %c2_191 = arith.constant 2 : index
    %c1_192 = arith.constant 1 : index
    %c0_193 = arith.constant 0 : index
    %235 = vector.load %arg4[%c0_190, %c2_191, %c1_192, %c0_193] : memref<1x4x17x256xf32, #tpu.memory_space<vmem>>, vector<1x1x16x256xf32>
    %236 = vector.shape_cast %235 : vector<1x1x16x256xf32> to vector<16x256xf32>
    %c0_194 = arith.constant 0 : index
    %c18 = arith.constant 18 : index
    %c0_195 = arith.constant 0 : index
    %237 = vector.load %arg2[%c0_194, %c18, %c0_195] : memref<1x37x256xf32, #tpu.memory_space<vmem>>, vector<1x1x256xf32>
    %238 = vector.shape_cast %237 : vector<1x1x256xf32> to vector<1x256xf32>
    %239 = vector.broadcast %238 : vector<1x256xf32> to vector<16x256xf32>
    %240 = arith.mulf %239, %236 : vector<16x256xf32>
    %241 = arith.addf %234, %240 : vector<16x256xf32>
    %c2_196 = arith.constant 2 : index
    %c1_197 = arith.constant 1 : index
    %c0_198 = arith.constant 0 : index
    %242 = vector.load %arg1[%c2_196, %c1_197, %c0_198] : memref<4x17x384xf32, #tpu.memory_space<vmem>>, vector<1x16x256xf32>
    %243 = vector.shape_cast %242 : vector<1x16x256xf32> to vector<16x256xf32>
    %c0_199 = arith.constant 0 : index
    %c20 = arith.constant 20 : index
    %c0_200 = arith.constant 0 : index
    %244 = vector.load %arg2[%c0_199, %c20, %c0_200] : memref<1x37x256xf32, #tpu.memory_space<vmem>>, vector<1x1x256xf32>
    %245 = vector.shape_cast %244 : vector<1x1x256xf32> to vector<1x256xf32>
    %246 = vector.broadcast %245 : vector<1x256xf32> to vector<16x256xf32>
    %247 = arith.mulf %246, %243 : vector<16x256xf32>
    %248 = arith.addf %241, %247 : vector<16x256xf32>
    %c0_201 = arith.constant 0 : index
    %c2_202 = arith.constant 2 : index
    %c0_203 = arith.constant 0 : index
    %c0_204 = arith.constant 0 : index
    %249 = vector.load %arg4[%c0_201, %c2_202, %c0_203, %c0_204] : memref<1x4x17x256xf32, #tpu.memory_space<vmem>>, vector<1x1x16x256xf32>
    %250 = vector.shape_cast %249 : vector<1x1x16x256xf32> to vector<16x256xf32>
    %c0_205 = arith.constant 0 : index
    %c24 = arith.constant 24 : index
    %c0_206 = arith.constant 0 : index
    %251 = vector.load %arg2[%c0_205, %c24, %c0_206] : memref<1x37x256xf32, #tpu.memory_space<vmem>>, vector<1x1x256xf32>
    %252 = vector.shape_cast %251 : vector<1x1x256xf32> to vector<1x256xf32>
    %253 = vector.broadcast %252 : vector<1x256xf32> to vector<16x256xf32>
    %254 = arith.mulf %253, %250 : vector<16x256xf32>
    %255 = arith.addf %248, %254 : vector<16x256xf32>
    %c2_207 = arith.constant 2 : index
    %c0_208 = arith.constant 0 : index
    %c0_209 = arith.constant 0 : index
    %256 = vector.load %arg1[%c2_207, %c0_208, %c0_209] : memref<4x17x384xf32, #tpu.memory_space<vmem>>, vector<1x16x256xf32>
    %257 = vector.shape_cast %256 : vector<1x16x256xf32> to vector<16x256xf32>
    %c0_210 = arith.constant 0 : index
    %c26 = arith.constant 26 : index
    %c0_211 = arith.constant 0 : index
    %258 = vector.load %arg2[%c0_210, %c26, %c0_211] : memref<1x37x256xf32, #tpu.memory_space<vmem>>, vector<1x1x256xf32>
    %259 = vector.shape_cast %258 : vector<1x1x256xf32> to vector<1x256xf32>
    %260 = vector.broadcast %259 : vector<1x256xf32> to vector<16x256xf32>
    %261 = arith.mulf %260, %257 : vector<16x256xf32>
    %262 = arith.addf %255, %261 : vector<16x256xf32>
    %c0_212 = arith.constant 0 : index
    %c3_213 = arith.constant 3 : index
    %c1_214 = arith.constant 1 : index
    %c0_215 = arith.constant 0 : index
    %263 = vector.load %arg4[%c0_212, %c3_213, %c1_214, %c0_215] : memref<1x4x17x256xf32, #tpu.memory_space<vmem>>, vector<1x1x16x256xf32>
    %264 = vector.shape_cast %263 : vector<1x1x16x256xf32> to vector<16x256xf32>
    %c0_216 = arith.constant 0 : index
    %c27 = arith.constant 27 : index
    %c0_217 = arith.constant 0 : index
    %265 = vector.load %arg2[%c0_216, %c27, %c0_217] : memref<1x37x256xf32, #tpu.memory_space<vmem>>, vector<1x1x256xf32>
    %266 = vector.shape_cast %265 : vector<1x1x256xf32> to vector<1x256xf32>
    %267 = vector.broadcast %266 : vector<1x256xf32> to vector<16x256xf32>
    %268 = arith.mulf %267, %264 : vector<16x256xf32>
    %269 = arith.addf %262, %268 : vector<16x256xf32>
    %c3_218 = arith.constant 3 : index
    %c1_219 = arith.constant 1 : index
    %c0_220 = arith.constant 0 : index
    %270 = vector.load %arg1[%c3_218, %c1_219, %c0_220] : memref<4x17x384xf32, #tpu.memory_space<vmem>>, vector<1x16x256xf32>
    %271 = vector.shape_cast %270 : vector<1x16x256xf32> to vector<16x256xf32>
    %c0_221 = arith.constant 0 : index
    %c29 = arith.constant 29 : index
    %c0_222 = arith.constant 0 : index
    %272 = vector.load %arg2[%c0_221, %c29, %c0_222] : memref<1x37x256xf32, #tpu.memory_space<vmem>>, vector<1x1x256xf32>
    %273 = vector.shape_cast %272 : vector<1x1x256xf32> to vector<1x256xf32>
    %274 = vector.broadcast %273 : vector<1x256xf32> to vector<16x256xf32>
    %275 = arith.mulf %274, %271 : vector<16x256xf32>
    %276 = arith.addf %269, %275 : vector<16x256xf32>
    %c0_223 = arith.constant 0 : index
    %c3_224 = arith.constant 3 : index
    %c0_225 = arith.constant 0 : index
    %c0_226 = arith.constant 0 : index
    %277 = vector.load %arg4[%c0_223, %c3_224, %c0_225, %c0_226] : memref<1x4x17x256xf32, #tpu.memory_space<vmem>>, vector<1x1x16x256xf32>
    %278 = vector.shape_cast %277 : vector<1x1x16x256xf32> to vector<16x256xf32>
    %c0_227 = arith.constant 0 : index
    %c33 = arith.constant 33 : index
    %c0_228 = arith.constant 0 : index
    %279 = vector.load %arg2[%c0_227, %c33, %c0_228] : memref<1x37x256xf32, #tpu.memory_space<vmem>>, vector<1x1x256xf32>
    %280 = vector.shape_cast %279 : vector<1x1x256xf32> to vector<1x256xf32>
    %281 = vector.broadcast %280 : vector<1x256xf32> to vector<16x256xf32>
    %282 = arith.mulf %281, %278 : vector<16x256xf32>
    %283 = arith.addf %276, %282 : vector<16x256xf32>
    %c3_229 = arith.constant 3 : index
    %c0_230 = arith.constant 0 : index
    %c0_231 = arith.constant 0 : index
    %284 = vector.load %arg1[%c3_229, %c0_230, %c0_231] : memref<4x17x384xf32, #tpu.memory_space<vmem>>, vector<1x16x256xf32>
    %285 = vector.shape_cast %284 : vector<1x16x256xf32> to vector<16x256xf32>
    %c0_232 = arith.constant 0 : index
    %c35 = arith.constant 35 : index
    %c0_233 = arith.constant 0 : index
    %286 = vector.load %arg2[%c0_232, %c35, %c0_233] : memref<1x37x256xf32, #tpu.memory_space<vmem>>, vector<1x1x256xf32>
    %287 = vector.shape_cast %286 : vector<1x1x256xf32> to vector<1x256xf32>
    %288 = vector.broadcast %287 : vector<1x256xf32> to vector<16x256xf32>
    %289 = arith.mulf %288, %285 : vector<16x256xf32>
    %290 = arith.addf %283, %289 : vector<16x256xf32>
    %c0_234 = arith.constant 0 : index
    %c3_235 = arith.constant 3 : index
    %c0_236 = arith.constant 0 : index
    %c0_237 = arith.constant 0 : index
    %291 = vector.load %arg3[%c0_234, %c3_235, %c0_236, %c0_237] : memref<1x4x16x256xf32, #tpu.memory_space<vmem>>, vector<1x1x16x256xf32>
    %292 = vector.shape_cast %291 : vector<1x1x16x256xf32> to vector<16x256xf32>
    %293 = vector.shape_cast %290 : vector<16x256xf32> to vector<1x1x16x256xf32>
    tpu.vector_store %arg3[%c0_234, %c3_235, %c0_236, %c0_237], %293 {strides = array<i32>} : memref<1x4x16x256xf32, #tpu.memory_space<vmem>>, vector<1x1x16x256xf32>,
    return
  }
  func.func @transform_0(%arg0: i32) -> (i32, i32, i32) {
    %c0_i32 = arith.constant 0 : i32
    %c0_i32_0 = arith.constant 0 : i32
    %c0_i32_1 = arith.constant 0 : i32
    %c0_i32_2 = arith.constant 0 : i32
    return %c0_i32, %c0_i32_0, %c0_i32_1 : i32, i32, i32
  }
  func.func @transform_1(%arg0: i32) -> (i32, i32, i32) {
    %c0_i32 = arith.constant 0 : i32
    %c0_i32_0 = arith.constant 0 : i32
    %c0_i32_1 = arith.constant 0 : i32
    return %arg0, %c0_i32, %c0_i32_0 : i32, i32, i32
  }
  func.func @transform_2(%arg0: i32) -> (i32, i32, i32, i32) {
    %c0_i32 = arith.constant 0 : i32
    %c0_i32_0 = arith.constant 0 : i32
    %c0_i32_1 = arith.constant 0 : i32
    %c0_i32_2 = arith.constant 0 : i32
    return %arg0, %c0_i32, %c0_i32_0, %c0_i32_1 : i32, i32, i32, i32
  }
}

</mosaic_0001>

<bundles_post_ra>
// kernel: forward.1
= control target key start
LH: loop header
LB: loop body
LE: loop exit
PB: predicated region body
PF: predicated region fallthrough
CT: control target
= control target key end

     0   :  { %s1851_s9 = smov 0   ;;  %s2894_s0 = inlined_call_operand.vmem [shape: f32[4,17,384], index: 0, kind: input, shape index: {}]   ;;  %s2895_s1 = inlined_call_operand.vmem [shape: f32[2,37,256], index: 1, kind: input, shape index: {}]   ;;  %s2896_s2 = inlined_call_operand.vmem [shape: f32[2,4,16,256], index: 2, kind: output, shape index: {}]  }
   0x1 LB: > { %s1659_s10 = sadd.s32 4294967295, %s1833_s9   ;;  %p1663_p0 = scmp.ge.s32.totalorder %s1833_s9, 1  ;;  %s1833_s9 = sphi %s1851_s9, %s12_s9  }
   0x2   : > { %p112_p1 = scmp.lt.s32.totalorder %s1833_s9, 3 }
   0x4   : > { %p113_p2 = pnand %p1663_p0, %p112_p1 }
   0x6   : > { %116 = sbr.rel (%p113_p2) target bundleno = 218 (0xda), region = 28 }
   0xb   : > { %v146_v0 = vld [vmem:[%s2894_s0 + $0x10] sm:$0xff]  ;;  %v1865_v1 = vld [vmem:[%s2894_s0] sm:$0xff]  ;;  %s1835_s15 = smov 127   ;;  %v1873_v2 = vld [vmem:[%s2894_s0 + $0x18] sm:$0xff]  ;;  %p134_p3 = scmp.lt.s32.totalorder %s1659_s10, 1  ;;  %v370_v8 = vlaneseq  ;;  %vm743_vm0 = vcmask 1040384  }
   0xc   : > { %166 = vrot.lane.b32.xlu1 %v146_v0, %s1835_s15  ;;  %162 = vrot.lane.b32.xlu0 %v1865_v1, %s1835_s15  ;;  %v1878_v3 = vld [vmem:[%s2894_s0 + $0x8] sm:$0xff]  ;;  %v1890_v5 = vld [vmem:[%s2894_s0 + $0x20] sm:$0xff]  ;;  %vm984_vm1 = vcmask 1046528   ;;  %vm180_vm2 = vcmask 1039360  }
   0xd   : > { %v149_v4 = vld [vmem:[%s2894_s0 + $0x28] sm:$0xff]  ;;  %s3024_s10 = smov (!%p134_p3, %s1659_s10), 1  ;;  %v151_v6 = vld [vmem:[%s2894_s0 + $0x38] sm:$0x1]  ;;  %v150_v7 = vld [vmem:[%s2894_s0 + $0x30] sm:$0x1] }
   0xe   : > { %s1817_s28 = smul.u32 80, %s3024_s10  ;;  %v1909_v9 = vld [vmem:[%s2894_s0 + $0x48] sm:$0xff]  ;;  %v152_v10 = vld [vmem:[%s2894_s0 + $0x40] sm:$0x1]  ;;  %v371_v11 = vshrl.u32 %v370_v8, 7  ;;  %v1669_v13 = vld [vmem:[%s2894_s0 + $0x58] sm:$0xff] }
   0xf   : > { %v1929_v14 = vld [vmem:[%s2894_s0 + $0x50] sm:$0xff]  ;;  %v1944_v20 = vld [vmem:[%s2894_s0 + $0x68] sm:$0xff]  ;;  %v1949_v21 = vld [vmem:[%s2894_s0 + $0x60] sm:$0xff]  ;;  %s1816_s5 = sshll.u32 %s3024_s10, 7 }
  0x10   : > { %168 = vrot.lane.b32.xlu1 %v1873_v2, %s1835_s15  ;;  %164 = vrot.lane.b32.xlu0 %v1878_v3, %s1835_s15  ;;  %s1917_s7 = scalar_lea.vmem %s2895_s1, %s1817_s28  ;;  %v1931_v15 = vsub.s32 0, %v371_v11  ;;  %v1933_v16 = vsub.s32 1, %v371_v11  ;;  %v1673_v32 = vld [vmem:[%s2894_s0 + $0x78] sm:$0x1]  ;;  %v1672_v33 = vld [vmem:[%s2894_s0 + $0x70] sm:$0xff]  ;;  %s2278_s13 = scalar_lea.vmem %s2896_s2, %s1816_s5 }
  0x11   : > { %v1695_v12 = vld [vmem:[%s1917_s7 + $0x4] ss:$8 sm:$0x3]  ;;  %v1700_v18 = vld [vmem:[%s1917_s7 + $0x15] ss:$8 sm:$0x3] }
  0x12   : > { %v390_v17 = vrot.slane %v1695_v12, %v1931_v15  ;;  %v394_v19 = vrot.slane %v1695_v12, %v1933_v16  ;;  %v1694_v22 = vld [vmem:[%s1917_s7 + $0x44] ss:$8 sm:$0x3]  ;;  %v415_v23 = vrot.slane %v1700_v18, %v1931_v15  ;;  %v419_v24 = vrot.slane %v1700_v18, %v1933_v16  ;;  %v1705_v25 = vld [vmem:[%s1917_s7 + $0x26] ss:$8 sm:$0x3] }
  0x13   : > { %v1771_v27 = vld [vmem:[%s1917_s7 + $0x2] ss:$8 sm:$0x3]  ;;  %v1962_v28 = vrot.slane %v1694_v22, %v1931_v15  ;;  %v1712_v31 = vld [vmem:[%s1917_s7 + $0x5] ss:$8 sm:$0x3]  ;;  %v1974_v34 = vrot.slane %v1694_v22, %v1933_v16  ;;  %v440_v36 = vrot.slane %v1705_v25, %v1931_v15  ;;  %v444_v37 = vrot.slane %v1705_v25, %v1933_v16 }
  0x14   : > { %172 = vrot.lane.b32.xlu1 %v149_v4, %s1835_s15  ;;  %170 = vrot.lane.b32.xlu0 %v1890_v5, %s1835_s15  ;;  %v397_v26 = vmul.f32 %v390_v17, %v1865_v1  ;;  %v398_v29 = vmul.f32 %v394_v19, %v1878_v3  ;;  %v399_v30 = vmul.f32 %v390_v17, %v1873_v2  ;;  %v1773_v46 = vld [vmem:[%s1917_s7 + $0x10] ss:$8 sm:$0x3]  ;;  %v1781_v50 = vld [vmem:[%s1917_s7 + $0x13] ss:$8 sm:$0x3] }
  0x15   : > { %v400_v35 = vmul.f32 %v394_v19, %v1890_v5  ;;  %v422_v38 = vmul.f32 %v1909_v9, %v415_v23  ;;  %v423_v39 = vmul.f32 %v1929_v14, %v419_v24  ;;  %v1982_v40 = vrot.slane %v1771_v27, %v1931_v15  ;;  %v1675_v51 = vld [vmem:[%s2894_s0 + $0x88] sm:$0x1]  ;;  %v1674_v52 = vld [vmem:[%s2894_s0 + $0x80] sm:$0x1]  ;;  %v2010_v53 = vld [vmem:[%s2894_s0 + $0x90] sm:$0xff] }
  0x16   : > { %v1985_v41 = vrot.slane %v1771_v27, %v1933_v16  ;;  %v401_v42 = vadd.f32 %v397_v26, %v1962_v28  ;;  %v424_v43 = vmul.f32 %v1949_v21, %v415_v23  ;;  %v519_v44 = vrot.slane %v1712_v31, %v1931_v15  ;;  %v2024_v58 = vld [vmem:[%s2894_s0 + $0x98] sm:$0xff]  ;;  %v2029_v59 = vld [vmem:[%s2894_s0 + $0xa8] sm:$0xff]  ;;  %v2050_v8 = vld [vmem:[%s2894_s0 + $0xb0] sm:$0xff] }
  0x17   : > { %v523_v45 = vrot.slane %v1712_v31, %v1933_v16  ;;  %v402_v47 = vadd.f32 %v398_v29, %v1974_v34  ;;  %v403_v48 = vadd.f32 %v399_v30, %v1962_v28  ;;  %v1998_v49 = vmul.f32 %v1982_v40, %v1873_v2  ;;  %v1710_v19 = vld [vmem:[%s1917_s7 + $0x37] ss:$8 sm:$0x3]  ;;  %v1718_v23 = vld [vmem:[%s1917_s7 + $0x16] ss:$8 sm:$0x3] }
  0x18   : > { %176 = vrot.lane.b32.xlu1 %v151_v6, %s1835_s15  ;;  %174 = vrot.lane.b32.xlu0 %v150_v7, %s1835_s15  ;;  %v404_v54 = vadd.f32 %v400_v35, %v1974_v34  ;;  %v425_v55 = vmul.f32 %v1944_v20, %v419_v24  ;;  %v2016_v56 = vmul.f32 %v1985_v41, %v1890_v5 }
  0x19   : > { %v2019_v57 = vmul.f32 %v519_v44, %v1865_v1  ;;  %v447_v60 = vmul.f32 %v2010_v53, %v440_v36  ;;  %v2033_v61 = vmul.f32 %v523_v45, %v1878_v3  ;;  %v1114_v62 = vrot.slane %v1773_v46, %v1931_v15 }
  0x1a   : > { %v1118_v63 = vrot.slane %v1773_v46, %v1933_v16  ;;  %v448_v0 = vmul.f32 %v2024_v58, %v444_v37  ;;  %v449_v4 = vmul.f32 %v2029_v59, %v440_v36  ;;  %v2040_v6 = vrot.slane %v1781_v50, %v1931_v15  ;;  %v1678_v36 = vld [vmem:[%s2894_s0 + $0xa0] sm:$0xff] }
  0x1b   : > { %v2043_v7 = vrot.slane %v1781_v50, %v1933_v16  ;;  %v2053_v11 = vmul.f32 %v1114_v62, %v1865_v1  ;;  %v428_v17 = vadd.f32 %v424_v43, %v403_v48  ;;  %v429_v18 = vadd.f32 %v425_v55, %v404_v54  ;;  %v2135_v54 = vld [vmem:[%s2894_s0 + $0xe0] sm:$0xff] }
  0x1c   : > { %218 = vrot.lane.b32.xlu1 %v1909_v9, %s1835_s15  ;;  %178 = vrot.lane.b32.xlu0 %v152_v10, %s1835_s15  ;;  %v426_v10 = vadd.f32 %v422_v38, %v401_v42  ;;  %v2056_v12 = vmul.f32 %v1118_v63, %v1878_v3  ;;  %v2060_v22 = vmul.f32 %v519_v44, %v1873_v2  ;;  %v1785_v3 = vld [vmem:[%s1917_s7 + $0x21] ss:$8 sm:$0x3] }
  0x1d   : > { %v450_v24 = vmul.f32 %v2050_v8, %v444_v37  ;;  %v2900_v25 = vrot.slane %v2053_v11, 7  ;;  %v2066_v26 = vmul.f32 %v1114_v62, %v1873_v2  ;;  %v2070_v1 = vmul.f32 %v1949_v21, %v2040_v6  ;;  %v1724_v62 = vld [vmem:[%s1917_s7 + $0x27] ss:$8 sm:$0x3] }
  0x1e   : > { %v2899_v27 = vrot.slane %v2056_v12, 7  ;;  %v2075_v29 = vmul.f32 %v523_v45, %v1890_v5  ;;  %v2078_v30 = vmul.f32 %v1118_v63, %v1890_v5  ;;  %v2082_v31 = vmul.f32 %v1944_v20, %v2043_v7  ;;  %v1793_v5 = vld [vmem:[%s1917_s7 + $0x24] ss:$8 sm:$0x3]  ;;  %v1681_v63 = vld [vmem:[%s2894_s0 + $0xb8] sm:$0xff] }
  0x1f   : > { %2927 = vst [vmem:[#allocation3_spill] sm:$0xff] %v2066_v26  ;;  %2928 = vst [vmem:[#allocation4_spill] sm:$0xff] %v2070_v1  ;;  %v465_v2 = vrot.slane %v1710_v19, %v1931_v15  ;;  %v569_v35 = vrot.slane %v1718_v23, %v1931_v15  ;;  %v451_v37 = vadd.f32 %v447_v60, %v426_v10 }
  0x20   : > { %222 = vrot.lane.b32.xlu1 %v1669_v13, %s1835_s15  ;;  %220 = vrot.lane.b32.xlu0 %v1929_v14, %s1835_s15  ;;  %v427_v13 = vadd.f32 %v423_v39, %v402_v47  ;;  %2929 = vst [vmem:[#allocation5_spill] sm:$0xff] %v2078_v30  ;;  %2930 = vst [vmem:[#allocation6_spill] sm:$0xff] %v2082_v31  ;;  %v2897_v39 = vrot.slane %v2078_v30, 7  ;;  %v1258_v42 = vrot.slane %v1785_v3, %v1931_v15  ;;  %v2114_v47 = vld [vmem:[%s2894_s0 + $0xd8] sm:$0xff] }
  0x21   : > { %v453_v43 = vadd.f32 %v449_v4, %v428_v17  ;;  %v2108_v45 = vmul.f32 %v1909_v9, %v569_v35  ;;  %v573_v46 = vrot.slane %v1718_v23, %v1933_v16  ;;  %v454_v48 = vadd.f32 %v450_v24, %v429_v18  ;;  %v2157_v17 = vld [vmem:[%s2894_s0 + $0xf0] sm:$0xff] }
  0x22   : > { %v2096_v38 = vadd.f32 %v448_v0, %v427_v13  ;;  %v2121_v50 = vsel %vm743_vm0, %v2899_v27, %v2897_v39  ;;  %v472_v55 = vmul.f32 %v2114_v47, %v465_v2  ;;  %v2149_v10 = vrot.slane %v1793_v5, %v1933_v16  ;;  %v1682_v39 = vld [vmem:[%s2894_s0 + $0xc0] sm:$0x1] }
  0x23   : > { %2931 = vst [vmem:[#allocation7_spill] sm:$0xff] %v2108_v45  ;;  %v2139_v60 = vmul.f32 %v1929_v14, %v573_v46  ;;  %v2152_v13 = vmul.f32 %v1949_v21, %v569_v35  ;;  %v2166_v23 = vmul.f32 %v1949_v21, %v1258_v42  ;;  %v2175_v35 = vld [vmem:[%s2894_s0 + $0xa8] sm:$0xff] }
  0x24   : > { %226 = vrot.lane.b32.xlu1 %v1944_v20, %s1835_s15  ;;  %224 = vrot.lane.b32.xlu0 %v1949_v21, %s1835_s15  ;;  %2935 = vst [vmem:[#allocation11_spill] sm:$0xff] %v2149_v10  ;;  %v619_v21 = vrot.slane %v1724_v62, %v1931_v15 }
  0x25   : > { %2934 = vst [vmem:[#allocation10_spill] sm:$0xff] %v2139_v60  ;;  %2936 = vst [vmem:[#allocation12_spill] sm:$0xff] %v2152_v13  ;;  %v1756_v13 = vld [vmem:[%s1917_s7 + $0x31] ss:$8 sm:$0x3] }
  0x26   : > { %2939 = vst [vmem:[#allocation15_spill] sm:$0xff] %v2166_v23  ;;  %v2209_v27 = vmul.f32 %v2010_v53, %v619_v21 }
  0x28   : > { %230 = vrot.lane.b32.xlu1 %v1673_v32, %s1835_s15  ;;  %228 = vrot.lane.b32.xlu0 %v1672_v33, %s1835_s15  ;;  %v469_v32 = vrot.slane %v1710_v19, %v1933_v16  ;;  %v2898_v33 = vrot.slane %v2066_v26, 7  ;;  %v2163_v19 = vmul.f32 %v1944_v20, %v573_v46  ;;  %v623_v46 = vrot.slane %v1724_v62, %v1933_v16 }
  0x29   : > { %2943 = vst [vmem:[#allocation19_spill] sm:$0xff] %v2209_v27 }
  0x2a   : > { %v2105_v44 = vsel %vm743_vm0, %v2900_v25, %v2898_v33  ;;  %v473_v0 = vmul.f32 %v2135_v54, %v469_v32  ;;  %2938 = vst [vmem:[#allocation14_spill] sm:$0xff] %v2163_v19  ;;  %v1689_v33 = vld [vmem:[%s2894_s0 + $0xf8] sm:$0xff]  ;;  %v1753_v19 = vld [vmem:[%s1917_s7 + $0x23] ss:$8 sm:$0x3] }
  0x2b   : > { %v846_v31 = vrot.slane %v1753_v19, %v1931_v15 }
  0x2c   : > { %234 = vrot.lane.b32.xlu1 %v1675_v51, %s1835_s15  ;;  %232 = vrot.lane.b32.xlu0 %v1674_v52, %s1835_s15  ;;  %v2124_v51 = vmul.f32 %v1909_v9, %v1258_v42  ;;  %v2127_v52 = vrot.slane %v1793_v5, %v1931_v15  ;;  %v1262_v9 = vrot.slane %v1785_v3, %v1933_v16  ;;  %v1797_v3 = vld [vmem:[%s1917_s7 + $0x32] ss:$8 sm:$0x3]  ;;  %v2903_v42 = vrot.slane %v2166_v23, 7  ;;  %v1692_v23 = vld [vmem:[%s2894_s0 + $0x110] sm:$0x1] }
  0x2d   : > { %v474_v5 = vmul.f32 %v2157_v17, %v465_v2  ;;  %v1402_v62 = vrot.slane %v1797_v3, %v1931_v15  ;;  %v1406_v25 = vrot.slane %v1797_v3, %v1933_v16  ;;  %v475_v2 = vmul.f32 %v1689_v33, %v469_v32 }
  0x2e   : > { %2932 = vst [vmem:[#allocation8_spill] sm:$0xff] %v2124_v51  ;;  %2933 = vst [vmem:[#allocation9_spill] sm:$0xff] %v2127_v52  ;;  %v2904_v4 = vrot.slane %v2124_v51, 7  ;;  %v2160_v18 = vmul.f32 %v1929_v14, %v1262_v9  ;;  %v2169_v24 = vmul.f32 %v1944_v20, %v1262_v9  ;;  %v2180_v14 = vmul.f32 %v2029_v59, %v2127_v52  ;;  %v2197_v9 = vld [vmem:[%s2894_s0 + $0xb0] sm:$0xff] }
  0x2f   : > { %v2214_v20 = vmul.f32 %v2175_v35, %v619_v21  ;;  %v2231_v3 = vmul.f32 %v2024_v58, %v623_v46  ;;  %v2234_v32 = vmul.f32 %v2010_v53, %v1402_v62  ;;  %v2237_v21 = vmul.f32 %v2024_v58, %v1406_v25  ;;  %v1746_v52 = vld [vmem:[%s1917_s7 + $0x20] ss:$8 sm:$0x3] }
  0x30   : > { %276 = vrot.lane.b32.xlu1 %v2024_v58, %s1835_s15  ;;  %274 = vrot.lane.b32.xlu0 %v2010_v53, %s1835_s15  ;;  %2937 = vst [vmem:[#allocation13_spill] sm:$0xff] %v2160_v18  ;;  %2940 = vst [vmem:[#allocation16_spill] sm:$0xff] %v2169_v24  ;;  %v1684_v53 = vld [vmem:[%s2894_s0 + $0xd0] sm:$0x1]  ;;  %v476_v58 = vadd.f32 %v472_v55, %v451_v37  ;;  %v805_v51 = vrot.slane %v1746_v52, %v1933_v16 }
  0x31   : > { %2941 = vst [vmem:[#allocation17_spill] sm:$0xff] %v2180_v14  ;;  %2944 = vst [vmem:[#allocation20_spill] sm:$0xff] %v2214_v20  ;;  %v2946_v14 = vrot.slane %v2169_v24, 7 }
  0x32   : > { %2949 = vst [vmem:[#allocation23_spill] sm:$0xff] %v2231_v3  ;;  %2950 = vst [vmem:[#allocation24_spill] sm:$0xff] %v2234_v32 }
  0x33   : > { %2951 = vst [vmem:[#allocation25_spill] sm:$0xff] %v2237_v21  ;;  %480 = vst [vmem:[%s2278_s13] sm:$0xff] %v476_v58  ;;  %v2309_v58 = vld [vmem:[%s2894_s0 + $0xf0] sm:$0xff] }
  0x34   : > { %280 = vrot.lane.b32.xlu1 %v2029_v59, %s1835_s15  ;;  %278 = vrot.lane.b32.xlu0 %v1678_v36, %s1835_s15  ;;  %v2184_v36 = vmul.f32 %v2050_v8, %v2149_v10  ;;  %v2947_v10 = vrot.slane %v2160_v18, 7  ;;  %v801_v18 = vrot.slane %v1746_v52, %v1931_v15  ;;  %v1748_v52 = vld [vmem:[%s2894_s0 + $0x98] sm:$0xfe] }
  0x36   : > { %2942 = vst [vmem:[#allocation18_spill] sm:$0xff] %v2184_v36  ;;  %v2221_v36 = vsel %vm743_vm0, %v2904_v4, %v2903_v42  ;;  %v2228_v27 = vsel %vm743_vm0, %v2947_v10, %v2946_v14  ;;  %v2240_v42 = vmul.f32 %v2029_v59, %v1402_v62  ;;  %v2243_v4 = vmul.f32 %v2197_v9, %v623_v46 }
  0x37   : > { %2945 = vst [vmem:[#allocation21_spill] sm:$0xff] %v2221_v36  ;;  %2948 = vst [vmem:[#allocation22_spill] sm:$0xff] %v2228_v27  ;;  %v2248_v10 = vmul.f32 %v2050_v8, %v1406_v25  ;;  %v2908_v14 = vrot.slane %v2234_v32, 7  ;;  %v2907_v59 = vrot.slane %v2237_v21, 7  ;;  %v477_v46 = vadd.f32 %v473_v0, %v2096_v38  ;;  %v1687_v38 = vld [vmem:[%s2894_s0 + $0xe8] sm:$0xff] }
  0x38   : > { %284 = vrot.lane.b32.xlu1 %v1681_v63, %s1835_s15  ;;  %282 = vrot.lane.b32.xlu0 %v2050_v8, %s1835_s15  ;;  %v1683_v63 = vld [vmem:[%s2894_s0 + $0xc8] sm:$0x1]  ;;  %2952 = vst [vmem:[#allocation26_spill] sm:$0xff] %v2240_v42  ;;  %2953 = vst [vmem:[#allocation27_spill] sm:$0xff] %v2243_v4  ;;  %v478_v62 = vadd.f32 %v474_v5, %v453_v43  ;;  %v479_v4 = vadd.f32 %v475_v2, %v454_v48 }
  0x39   : > { %2954 = vst [vmem:[#allocation28_spill] sm:$0xff] %v2248_v10  ;;  %v2905_v25 = vrot.slane %v2248_v10, 7  ;;  %481 = vst [vmem:[%s2278_s13 + $0x8] sm:$0xff] %v477_v46  ;;  %v1805_v0 = vld [vmem:[%s1917_s7 + $0x35] ss:$8 sm:$0x3] }
  0x3a   : > { %482 = vst [vmem:[%s2278_s13 + $0x10] sm:$0xff] %v478_v62  ;;  %483 = vst [vmem:[%s2278_s13 + $0x18] sm:$0xff] %v479_v4  ;;  %v2299_v5 = vrot.slane %v1805_v0, %v1931_v15  ;;  %v1809_v2 = vld [vmem:[%s1917_s7 + $0x43] ss:$8 sm:$0x3] }
  0x3b   : > { %v2291_v55 = vsel %vm743_vm0, %v2907_v59, %v2905_v25  ;;  %v1550_v62 = vrot.slane %v1809_v2, %v1933_v16  ;;  %v1691_v25 = vld [vmem:[%s2894_s0 + $0x108] sm:$0x1]  ;;  %v1736_v59 = vld [vmem:[%s1917_s7 + $0x7] ss:$8 sm:$0x3] }
  0x3c   : > { %288 = vrot.lane.b32.xlu1 %v1683_v63, %s1835_s15  ;;  %286 = vrot.lane.b32.xlu0 %v1682_v39, %s1835_s15  ;;  %v1730_v63 = vld [vmem:[%s1917_s7 + $0x40] ss:$8 sm:$0x3]  ;;  %v2906_v39 = vrot.slane %v2240_v42, 7  ;;  %2958 = vst [vmem:[#allocation32_spill] sm:$0xff] %v2291_v55  ;;  %2959 = vst [vmem:[#allocation33_spill] sm:$0xff] %v2299_v5  ;;  %v2316_v46 = vmul.f32 %v2309_v58, %v2299_v5 }
  0x3d   : > { %v669_v20 = vrot.slane %v1730_v63, %v1931_v15  ;;  %v673_v8 = vrot.slane %v1730_v63, %v1933_v16  ;;  %v689_v10 = vld [vmem:[%s2894_s0] sm:$0xfe] }
  0x3e   : > { %v2270_v37 = vsel %vm743_vm0, %v2908_v14, %v2906_v39  ;;  %2961 = vst [vmem:[#allocation35_spill] sm:$0xff] %v2316_v46  ;;  %v2332_v39 = vrot.slane %v1805_v0, %v1933_v16  ;;  %v728_v14 = vrot.slane %v1736_v59, %v1931_v15  ;;  %v732_v0 = vrot.slane %v1736_v59, %v1933_v16 }
  0x3f   : > { %2955 = vst [vmem:[#allocation29_spill] sm:$0xff] %v2270_v37  ;;  %v2281_v43 = vmul.f32 %v2114_v47, %v669_v20  ;;  %v2284_v48 = vmul.f32 %v2135_v54, %v673_v8  ;;  %v2312_v4 = vmul.f32 %v2309_v58, %v669_v20  ;;  %v1690_v20 = vld [vmem:[%s2894_s0 + $0x100] sm:$0xff] }
  0x40   : > { %330 = vrot.lane.b32.xlu1 %v2114_v47, %s1835_s15  ;;  %290 = vrot.lane.b32.xlu0 %v1684_v53, %s1835_s15  ;;  %v1546_v53 = vrot.slane %v1809_v2, %v1931_v15  ;;  %2964 = vst [vmem:[#allocation38_spill] sm:$0xff] %v2332_v39  ;;  %v2344_v2 = vld [vmem:[%s2894_s0 + $0xf8] sm:$0xff] }
  0x41   : > { %2956 = vst [vmem:[#allocation30_spill] sm:$0xff] %v2281_v43  ;;  %2957 = vst [vmem:[#allocation31_spill] sm:$0xff] %v2284_v48  ;;  %v2362_v59 = vmul.f32 %v2344_v2, %v673_v8  ;;  %v721_v48 = vld [vmem:[%s2894_s0 + $0x8] sm:$0xff]  ;;  %v693_v8 = vld [vmem:[%s2894_s0 + $0x30] sm:$0x1] }
  0x42   : > { %2960 = vst [vmem:[#allocation34_spill] sm:$0xff] %v2312_v4  ;;  %v2320_v63 = vmul.f32 %v2114_v47, %v1546_v53  ;;  %v2339_v47 = vmul.f32 %v2135_v54, %v1550_v62  ;;  %v690_v4 = vld [vmem:[%s2894_s0 + $0x8] sm:$0xfe]  ;;  %v736_v24 = vmul.f32 %v732_v0, %v721_v48 }
  0x43   : > { %2965 = vst [vmem:[#allocation39_spill] sm:$0xff] %v2362_v59  ;;  %v694_v59 = vld [vmem:[%s2894_s0 + $0x38] sm:$0x1] }
  0x44   : > { %334 = vrot.lane.b32.xlu1 %v1687_v38, %s1835_s15  ;;  %332 = vrot.lane.b32.xlu0 %v2135_v54, %s1835_s15  ;;  %2962 = vst [vmem:[#allocation36_spill] sm:$0xff] %v2320_v63  ;;  %v2323_v38 = vmul.f32 %v2309_v58, %v1546_v53  ;;  %v1735_v53 = vld [vmem:[%s1917_s7 + $0x1] ss:$8 sm:$0x3]  ;;  %v745_v48 = vrot.slane %v736_v24, 7 }
  0x45   : > { %v692_v54 = vld [vmem:[%s2894_s0 + $0x20] sm:$0xff]  ;;  %v701_v42 = vrot.slane %v1735_v53, %v1931_v15  ;;  %v705_v46 = vrot.slane %v1735_v53, %v1933_v16  ;;  %v1693_v53 = vld [vmem:[%s2894_s0 + $0x118] sm:$0x1] }
  0x46   : > { %2963 = vst [vmem:[#allocation37_spill] sm:$0xff] %v2323_v38  ;;  %v738_v21 = vmul.f32 %v732_v0, %v692_v54  ;;  %v2966_v0 = vrot.slane %v2323_v38, 7 }
  0x47   : > { %v708_v55 = vmul.f32 %v701_v42, %v689_v10  ;;  %v709_v37 = vmul.f32 %v705_v46, %v690_v4  ;;  %v711_v3 = vmul.f32 %v705_v46, %v692_v54  ;;  %v2967_v54 = vrot.slane %v2320_v63, 7 }
  0x48   : > { %338 = vrot.lane.b32.xlu1 %v1689_v33, %s1835_s15  ;;  %336 = vrot.lane.b32.xlu0 %v2157_v17, %s1835_s15  ;;  %v691_v33 = vld [vmem:[%s2894_s0 + $0x18] sm:$0xff]  ;;  %v720_v17 = vld [vmem:[%s2894_s0] sm:$0xff] }
  0x49   : > { %v735_v43 = vmul.f32 %v728_v14, %v720_v17  ;;  %v737_v5 = vmul.f32 %v728_v14, %v691_v33  ;;  %v710_v32 = vmul.f32 %v701_v42, %v691_v33  ;;  %v712_v14 = vmul.f32 %v701_v42, %v693_v8  ;;  %v1745_v8 = vld [vmem:[%s2894_s0 + $0x50] sm:$0xff] }
  0x4a   : > { %v713_v17 = vmul.f32 %v705_v46, %v694_v59  ;;  %v714_v10 = vadd.f32 %v708_v55, %v1962_v28  ;;  %v715_v4 = vadd.f32 %v709_v37, %v1974_v34  ;;  %v2399_v59 = vsel %vm743_vm0, %v2967_v54, %v2966_v0  ;;  %v1738_v55 = vld [vmem:[%s2894_s0 + $0x50] sm:$0xfe] }
  0x4b   : > { %v716_v33 = vadd.f32 %v710_v32, %v1962_v28  ;;  %v718_v42 = vadd.f32 %v712_v14, %v1962_v28  ;;  %v744_v46 = vrot.slane %v735_v43, 7  ;;  %2968 = vst [vmem:[#allocation40_spill] sm:$0xff] %v2399_v59  ;;  %v2403_v37 = vmul.f32 %v2344_v2, %v2332_v39  ;;  %v1737_v43 = vld [vmem:[%s2894_s0 + $0x48] sm:$0xfe] }
  0x4c   : > { %342 = vrot.lane.b32.xlu1 %v1691_v25, %s1835_s15  ;;  %340 = vrot.lane.b32.xlu0 %v1690_v20, %s1835_s15  ;;  %v717_v25 = vadd.f32 %v711_v3, %v1974_v34  ;;  %v719_v20 = vadd.f32 %v713_v17, %v1974_v34  ;;  %v2406_v32 = vmul.f32 %v2344_v2, %v1550_v62  ;;  %v746_v24 = vrot.slane %v737_v5, 7  ;;  %v1739_v62 = vld [vmem:[%s2894_s0 + $0x60] sm:$0xff]  ;;  %v1743_v39 = vld [vmem:[%s1917_s7 + $0x12] ss:$8 sm:$0x3] }
  0x4d   : > { %2969 = vst [vmem:[#allocation41_spill] sm:$0xff] %v2403_v37  ;;  %v748_v3 = vrot.slane %v738_v21, 7  ;;  %v1741_v21 = vld [vmem:[%s2894_s0 + $0x78] sm:$0x1]  ;;  %v1742_v5 = vld [vmem:[%s2894_s0 + $0x80] sm:$0x1]  ;;  %v756_v0 = vadd.f32 %v744_v46, %v714_v10  ;;  %v757_v54 = vadd.f32 %v745_v48, %v715_v4  ;;  %v774_v27 = vrot.slane %v1743_v39, %v1931_v15 }
  0x4e   : > { %v747_v14 = vsel %vm743_vm0, %v744_v46, %v746_v24  ;;  %v760_v37 = vadd.f32 %v746_v24, %v718_v42  ;;  %v778_v36 = vrot.slane %v1743_v39, %v1933_v16  ;;  %v850_v10 = vrot.slane %v1753_v19, %v1933_v16  ;;  %v1747_v39 = vld [vmem:[%s2894_s0 + $0x90] sm:$0xfe] }
  0x4f   : > { %v749_v17 = vsel %vm743_vm0, %v745_v48, %v748_v3  ;;  %v758_v38 = vadd.f32 %v747_v14, %v716_v33  ;;  %v761_v59 = vadd.f32 %v748_v3, %v719_v20  ;;  %v873_v4 = vrot.slane %v1756_v13, %v1931_v15 }
  0x50   : > { %346 = vrot.lane.b32.xlu1 %v1693_v53, %s1835_s15  ;;  %344 = vrot.lane.b32.xlu0 %v1692_v23, %s1835_s15  ;;  %v1740_v23 = vld [vmem:[%s2894_s0 + $0x68] sm:$0xff]  ;;  %v759_v63 = vadd.f32 %v749_v17, %v717_v25  ;;  %v877_v33 = vrot.slane %v1756_v13, %v1933_v16  ;;  %v781_v25 = vmul.f32 %v1737_v43, %v774_v27  ;;  %v1751_v43 = vld [vmem:[%s2894_s0 + $0xc0] sm:$0x1] }
  0x51   : > { %v1744_v53 = vld [vmem:[%s2894_s0 + $0x48] sm:$0xff]  ;;  %v782_v42 = vmul.f32 %v1738_v55, %v778_v36  ;;  %v783_v46 = vmul.f32 %v1739_v62, %v774_v27  ;;  %v784_v48 = vmul.f32 %v1740_v23, %v778_v36  ;;  %v785_v20 = vmul.f32 %v1741_v21, %v774_v27 }
  0x52   : > { %v786_v24 = vmul.f32 %v1742_v5, %v778_v36  ;;  %v808_v3 = vmul.f32 %v1744_v53, %v801_v18  ;;  %v809_v19 = vmul.f32 %v1745_v8, %v805_v51  ;;  %v787_v14 = vadd.f32 %v781_v25, %v756_v0  ;;  %v1752_v55 = vld [vmem:[%s2894_s0 + $0xc8] sm:$0x1]  ;;  %v1754_v0 = vld [vmem:[%s2894_s0 + $0x90] sm:$0xff] }
  0x53   : > { %v788_v17 = vadd.f32 %v782_v42, %v757_v54  ;;  %v789_v30 = vadd.f32 %v783_v46, %v758_v38  ;;  %v790_v13 = vadd.f32 %v784_v48, %v759_v63  ;;  %v791_v26 = vadd.f32 %v785_v20, %v760_v37 }
  0x54   : > { %v792_v1 = vadd.f32 %v786_v24, %v761_v59  ;;  %v810_v60 = vmul.f32 %v1739_v62, %v801_v18  ;;  %v811_v45 = vmul.f32 %v1740_v23, %v805_v51  ;;  %v816_v27 = vrot.slane %v808_v3, 7  ;;  %v1755_v18 = vld [vmem:[%s2894_s0 + $0x98] sm:$0xff] }
  0x55   : > { %v817_v36 = vrot.slane %v809_v19, 7  ;;  %v853_v21 = vmul.f32 %v1747_v39, %v846_v31  ;;  %v854_v5 = vmul.f32 %v1748_v52, %v850_v10  ;;  %v855_v63 = vmul.f32 %v2175_v35, %v846_v31  ;;  %v1763_v39 = vld [vmem:[%s1917_s7 + $0x34] ss:$8 sm:$0x3] }
  0x56   : > { %v818_v53 = vrot.slane %v810_v60, 7  ;;  %v820_v8 = vrot.slane %v811_v45, 7  ;;  %v856_v38 = vmul.f32 %v2197_v9, %v850_v10  ;;  %v828_v51 = vadd.f32 %v816_v27, %v787_v14  ;;  %v1766_v19 = vld [vmem:[%s1917_s7 + $0x42] ss:$8 sm:$0x3] }
  0x57   : > { %v829_v59 = vadd.f32 %v817_v36, %v788_v17  ;;  %v857_v37 = vmul.f32 %v1751_v43, %v846_v31  ;;  %v858_v62 = vmul.f32 %v1752_v55, %v850_v10  ;;  %v880_v24 = vmul.f32 %v1754_v0, %v873_v4  ;;  %v1757_v31 = vld [vmem:[%s2894_s0 + $0xd8] sm:$0xfe]  ;;  %v1758_v10 = vld [vmem:[%s2894_s0 + $0xe0] sm:$0xfe] }
  0x58   : > { %v819_v45 = vsel %vm743_vm0, %v816_v27, %v818_v53  ;;  %v821_v60 = vsel %vm743_vm0, %v817_v36, %v820_v8  ;;  %v832_v23 = vadd.f32 %v818_v53, %v791_v26  ;;  %v833_v54 = vadd.f32 %v820_v8, %v792_v1  ;;  %v1761_v53 = vld [vmem:[%s2894_s0 + $0x108] sm:$0x1] }
  0x59   : > { %v830_v25 = vadd.f32 %v819_v45, %v789_v30  ;;  %v831_v42 = vadd.f32 %v821_v60, %v790_v13  ;;  %v859_v46 = vadd.f32 %v853_v21, %v828_v51  ;;  %v860_v48 = vadd.f32 %v854_v5, %v829_v59 }
  0x5a   : > { %v863_v52 = vadd.f32 %v857_v37, %v832_v23  ;;  %v864_v20 = vadd.f32 %v858_v62, %v833_v54  ;;  %v881_v3 = vmul.f32 %v1755_v18, %v877_v33  ;;  %v882_v30 = vmul.f32 %v2175_v35, %v873_v4  ;;  %v1762_v35 = vld [vmem:[%s2894_s0 + $0x110] sm:$0x1] }
  0x5b   : > { %v861_v26 = vadd.f32 %v855_v63, %v830_v25  ;;  %v862_v1 = vadd.f32 %v856_v38, %v831_v42  ;;  %v883_v14 = vmul.f32 %v2197_v9, %v877_v33  ;;  %v888_v17 = vrot.slane %v880_v24, 7  ;;  %v1764_v63 = vld [vmem:[%s2894_s0 + $0xd8] sm:$0xff]  ;;  %v1765_v38 = vld [vmem:[%s2894_s0 + $0xe0] sm:$0xff] }
  0x5c   : > { %v889_v13 = vrot.slane %v881_v3, 7  ;;  %v918_v43 = vrot.slane %v1763_v39, %v1931_v15  ;;  %v922_v55 = vrot.slane %v1763_v39, %v1933_v16  ;;  %v890_v27 = vrot.slane %v882_v30, 7 }
  0x5d   : > { %v892_v36 = vrot.slane %v883_v14, 7  ;;  %v945_v21 = vrot.slane %v1766_v19, %v1931_v15  ;;  %v949_v5 = vrot.slane %v1766_v19, %v1933_v16  ;;  %v900_v9 = vadd.f32 %v888_v17, %v859_v46 }
  0x5e   : > { %v901_v4 = vadd.f32 %v889_v13, %v860_v48  ;;  %v925_v33 = vmul.f32 %v1757_v31, %v918_v43  ;;  %v926_v8 = vmul.f32 %v1758_v10, %v922_v55  ;;  %v891_v0 = vsel %vm743_vm0, %v888_v17, %v890_v27 }
  0x5f   : > { %v893_v18 = vsel %vm743_vm0, %v889_v13, %v892_v36  ;;  %v904_v51 = vadd.f32 %v890_v27, %v863_v52  ;;  %v905_v59 = vadd.f32 %v892_v36, %v864_v20  ;;  %v902_v37 = vadd.f32 %v891_v0, %v861_v26 }
  0x60   : > { %v903_v62 = vadd.f32 %v893_v18, %v862_v1  ;;  %v927_v45 = vmul.f32 %v2309_v58, %v918_v43  ;;  %v928_v60 = vmul.f32 %v2344_v2, %v922_v55  ;;  %v1562_v23 = vrot.slane %v2339_v47, 7  ;;  %v1711_v18 = vld [vmem:[%s1917_s7 + $0x3] ss:$8 sm:$0x3] }
  0x61   : > { %v929_v54 = vmul.f32 %v1761_v53, %v918_v43  ;;  %v930_v25 = vmul.f32 %v1762_v35, %v922_v55  ;;  %v931_v42 = vadd.f32 %v925_v33, %v900_v9  ;;  %v932_v46 = vadd.f32 %v926_v8, %v901_v4 }
  0x62   : > { %v933_v48 = vadd.f32 %v927_v45, %v902_v37  ;;  %v952_v39 = vmul.f32 %v1764_v63, %v945_v21  ;;  %v953_v24 = vmul.f32 %v1765_v38, %v949_v5  ;;  %v954_v52 = vmul.f32 %v2309_v58, %v945_v21 }
  0x63   : > { %v935_v3 = vadd.f32 %v929_v54, %v904_v51  ;;  %v936_v19 = vadd.f32 %v930_v25, %v905_v59  ;;  %v955_v20 = vmul.f32 %v2344_v2, %v949_v5  ;;  %v934_v31 = vadd.f32 %v928_v60, %v903_v62  ;;  %v1772_v51 = vld [vmem:[%s1917_s7 + $0x6] ss:$8 sm:$0x3]  ;;  %v1010_v60 = vld [vmem:[%s1917_s7] ss:$8 sm:$0x3] }
  0x64   : > { %v960_v10 = vrot.slane %v952_v39, 7  ;;  %v961_v26 = vrot.slane %v953_v24, 7  ;;  %v1565_v1 = vrot.slane %v2406_v32, 7  ;;  %v962_v30 = vrot.slane %v954_v52, 7 }
  0x65   : > { %v964_v14 = vrot.slane %v955_v20, 7  ;;  %v494_v62 = vrot.slane %v1711_v18, %v1931_v15  ;;  %v498_v45 = vrot.slane %v1711_v18, %v1933_v16  ;;  %v1073_v54 = vrot.slane %v1772_v51, %v1931_v15 }
  0x66   : > { %v972_v17 = vadd.f32 %v960_v10, %v931_v42  ;;  %v973_v13 = vadd.f32 %v961_v26, %v932_v46  ;;  %v2509_v43 = vsel %vm743_vm0, %v1562_v23, %v1565_v1  ;;  %v963_v58 = vsel %vm743_vm0, %v960_v10, %v962_v30 }
  0x67   : > { %v965_v2 = vsel %vm743_vm0, %v961_v26, %v964_v14  ;;  %v976_v55 = vadd.f32 %v962_v30, %v935_v3  ;;  %v977_v27 = vadd.f32 %v964_v14, %v936_v19  ;;  %v974_v36 = vadd.f32 %v963_v58, %v933_v48  ;;  %v1034_v48 = vld [vmem:[%s2894_s0] sm:$0xfe] }
  0x68   : > { %v975_v21 = vadd.f32 %v965_v2, %v934_v31  ;;  %v985_v5 = vrot.slane %v972_v17, 1  ;;  %v988_v53 = vrot.slane %v973_v13, 1  ;;  %v1077_v25 = vrot.slane %v1772_v51, %v1933_v16 }
  0x69   : > { %v991_v35 = vrot.slane %v976_v55, 1  ;;  %v993_v9 = vrot.slane %v977_v27, 1  ;;  %v986_v4 = vrot.slane %v974_v36, 1  ;;  %v2534_v3 = vrot.slane %v1010_v60, %v1931_v15  ;;  %v1035_v36 = vld [vmem:[%s2894_s0 + $0x8] sm:$0xfe] }
  0x6a   : > { %v989_v33 = vrot.slane %v975_v21, 1  ;;  %v2537_v19 = vrot.slane %v1010_v60, %v1933_v16  ;;  %v1053_v14 = vmul.f32 %v1982_v40, %v1034_v48  ;;  %v1713_v48 = vld [vmem:[%s1917_s7 + $0x14] ss:$8 sm:$0x3] }
  0x6b   : > { %v987_v8 = vsel %vm984_vm1, %v985_v5, %v986_v4  ;;  %v992_v38 = vsel %vm984_vm1, %v986_v4, %v991_v35 }
  0x6c   : > { %v990_v63 = vsel %vm984_vm1, %v988_v53, %v989_v33  ;;  %v994_v0 = vsel %vm984_vm1, %v989_v33, %v993_v9  ;;  %1767 = vst [vmem:[%s2278_s13 + $0x40] sm:$0xff] %v987_v8  ;;  %1769 = vst [vmem:[%s2278_s13 + $0x50] sm:$0xff] %v992_v38 }
  0x6d   : > { %1768 = vst [vmem:[%s2278_s13 + $0x48] sm:$0xff] %v990_v63  ;;  %1770 = vst [vmem:[%s2278_s13 + $0x58] sm:$0xff] %v994_v0 }
  0x7e   : > { %v167_v59 = vpop.permute.xlu1 %166  ;;  %v163_v37 = vpop.permute.xlu0 %162 }
  0x82   : > { %v169_v42 = vpop.permute.xlu1 %168  ;;  %v165_v46 = vpop.permute.xlu0 %164 }
  0x83   : > { %v181_v39 = vsel %vm180_vm2, %v163_v37, %v165_v46  ;;  %v182_v24 = vsel %vm180_vm2, %v165_v46, %v167_v59 }
  0x84   : > { %193 = vst [vmem:[#allocation2 + $0xb0] sm:$0xff] %v181_v39  ;;  %194 = vst [vmem:[#allocation2] sm:$0xff] %v182_v24  ;;  %v501_v52 = vmul.f32 %v494_v62, %v181_v39  ;;  %v502_v20 = vmul.f32 %v498_v45, %v182_v24  ;;  %v1080_v31 = vmul.f32 %v1073_v54, %v181_v39 }
  0x85   : > { %v1081_v10 = vmul.f32 %v1077_v25, %v182_v24 }
  0x86   : > { %v505_v26 = vadd.f32 %v501_v52, %v1962_v28  ;;  %v506_v30 = vadd.f32 %v502_v20, %v1974_v34  ;;  %v173_v17 = vpop.permute.xlu1 %172  ;;  %v171_v13 = vpop.permute.xlu0 %170  ;;  %v1088_v58 = vrot.slane %v1080_v31, 7 }
  0x87   : > { %v1089_v2 = vrot.slane %v1081_v10, 7  ;;  %v183_v55 = vsel %vm180_vm2, %v169_v42, %v171_v13  ;;  %v184_v27 = vsel %vm180_vm2, %v171_v13, %v173_v17  ;;  %v1038_v13 = vld [vmem:[%s2894_s0 + $0x30] sm:$0x1] }
  0x88   : > { %v503_v21 = vmul.f32 %v494_v62, %v183_v55  ;;  %v504_v5 = vmul.f32 %v498_v45, %v184_v27  ;;  %v1024_v53 = vmul.f32 %v2534_v3, %v183_v55  ;;  %v1025_v35 = vmul.f32 %v2537_v19, %v184_v27 }
  0x89   : > { %v2549_v9 = vmul.f32 %v1073_v54, %v183_v55  ;;  %v2551_v4 = vmul.f32 %v1077_v25, %v184_v27  ;;  %v2554_v33 = vadd.f32 %v2019_v57, %v505_v26  ;;  %v2557_v8 = vadd.f32 %v2033_v61, %v506_v30  ;;  %v1782_v26 = vld [vmem:[%s1917_s7 + $0x17] ss:$8 sm:$0x3] }
  0x8a   : > { %v507_v63 = vadd.f32 %v503_v21, %v1962_v28  ;;  %v508_v38 = vadd.f32 %v504_v5, %v1974_v34  ;;  %v1030_v0 = vadd.f32 %v1024_v53, %v1962_v28  ;;  %v1031_v18 = vadd.f32 %v1025_v35, %v1974_v34  ;;  %v177_v51 = vpop.permute.xlu1 %176  ;;  %v175_v59 = vpop.permute.xlu0 %174  ;;  %v1774_v21 = vld [vmem:[%s1917_s7 + $0x11] ss:$8 sm:$0x3] }
  0x8b   : > { %v1004_v37 = vld [vmem:[#allocation2 + $0xb0] sm:$0xfe]  ;;  %v1005_v62 = vld [vmem:[#allocation2] sm:$0xfe]  ;;  %v1054_v45 = vmul.f32 %v1985_v41, %v1035_v36  ;;  %v1090_v57 = vrot.slane %v2549_v9, 7  ;;  %v1092_v61 = vrot.slane %v2551_v4, 7  ;;  %v185_v60 = vsel %vm180_vm2, %v175_v59, %v177_v51 }
  0x8c   : > { %v1022_v54 = vmul.f32 %v2534_v3, %v1004_v37  ;;  %v1023_v25 = vmul.f32 %v2537_v19, %v1005_v62  ;;  %v1061_v42 = vadd.f32 %v1998_v49, %v1030_v0  ;;  %v1062_v46 = vadd.f32 %v2016_v56, %v1031_v18  ;;  %197 = vst [vmem:[#allocation2 + $0x60] sm:$0x1] %v185_v60  ;;  %v1039_v18 = vld [vmem:[%s2894_s0 + $0x38] sm:$0x1] }
  0x8d   : > { %v1091_v39 = vsel %vm743_vm0, %v1088_v58, %v1090_v57  ;;  %v1093_v24 = vsel %vm743_vm0, %v1089_v2, %v1092_v61  ;;  %v2579_v52 = vadd.f32 %v2060_v22, %v507_v63  ;;  %v2582_v20 = vadd.f32 %v2075_v29, %v508_v38 }
  0x8e   : > { %v1028_v49 = vadd.f32 %v1022_v54, %v1962_v28  ;;  %v1029_v56 = vadd.f32 %v1023_v25, %v1974_v34  ;;  %v219_v31 = vpop.permute.xlu1 %218  ;;  %v179_v10 = vpop.permute.xlu0 %178  ;;  %v1102_v30 = vadd.f32 %v1091_v39, %v1061_v42  ;;  %v1103_v17 = vadd.f32 %v1093_v24, %v1062_v46 }
  0x8f   : > { %v186_v22 = vsel %vm180_vm2, %v177_v51, %v179_v10  ;;  %v544_v55 = vrot.slane %v1713_v48, %v1931_v15  ;;  %v2593_v29 = vrot.slane %v1713_v48, %v1933_v16  ;;  %v1217_v35 = vrot.slane %v1782_v26, %v1931_v15 }
  0x90   : > { %v1059_v27 = vadd.f32 %v1053_v14, %v1028_v49  ;;  %v1060_v36 = vadd.f32 %v1054_v45, %v1029_v56  ;;  %198 = vst [vmem:[#allocation2 + $0x28] sm:$0x1] %v186_v22  ;;  %v1143_v5 = vadd.f32 %v2105_v44, %v1102_v30  ;;  %v2598_v53 = vadd.f32 %v2121_v50, %v1103_v17 }
  0x91   : > { %v1057_v0 = vmul.f32 %v1982_v40, %v1038_v13  ;;  %v2608_v50 = vrot.slane %v1774_v21, %v1931_v15  ;;  %v1221_v62 = vrot.slane %v1782_v26, %v1933_v16  ;;  %v1775_v40 = vld [vmem:[%s2894_s0 + $0x48] sm:$0xfe]  ;;  %v2970_v54 = vrot.slane %v2053_v11, 7 }
  0x92   : > { %v1100_v63 = vadd.f32 %v1088_v58, %v1059_v27  ;;  %v1101_v38 = vadd.f32 %v1089_v2, %v1060_v36  ;;  %v223_v51 = vpop.permute.xlu1 %222  ;;  %v221_v14 = vpop.permute.xlu0 %220  ;;  %v1776_v2 = vld [vmem:[%s2894_s0 + $0x50] sm:$0xfe]  ;;  %v1058_v42 = vmul.f32 %v1985_v41, %v1039_v18  ;;  %v2630_v56 = vrot.slane %v1774_v21, %v1933_v16  ;;  %v2972_v36 = vld [vmem:[#allocation7_spill] sm:$0xff] }
  0x93   : > { %v1008_v59 = vld [vmem:[#allocation2 + $0x60] sm:$0x1]  ;;  %v236_v37 = vsel %vm180_vm2, %v219_v31, %v221_v14  ;;  %v237_v44 = vsel %vm180_vm2, %v221_v14, %v223_v51  ;;  %v1197_v41 = vmul.f32 %v1775_v40, %v2040_v6 }
  0x94   : > { %v1026_v58 = vmul.f32 %v2534_v3, %v1008_v59  ;;  %249 = vst [vmem:[#allocation2 + $0x40] sm:$0xff] %v236_v37  ;;  %250 = vst [vmem:[#allocation2 + $0x78] sm:$0xff] %v237_v44  ;;  %v551_v45 = vmul.f32 %v544_v55, %v236_v37  ;;  %v552_v60 = vmul.f32 %v2593_v29, %v237_v44  ;;  %v2971_v3 = vrot.slane %v2056_v12, 7 }
  0x95   : > { %v1141_v25 = vadd.f32 %v2970_v54, %v1100_v63  ;;  %v2624_v48 = vmul.f32 %v1217_v35, %v236_v37  ;;  %v1198_v12 = vmul.f32 %v1776_v2, %v2043_v7  ;;  %v1225_v26 = vmul.f32 %v1221_v62, %v237_v44  ;;  %v2973_v63 = vld [vmem:[#allocation10_spill] sm:$0xff] }
  0x96   : > { %v1142_v46 = vadd.f32 %v2971_v3, %v1101_v38  ;;  %v1032_v39 = vadd.f32 %v1026_v58, %v1962_v28  ;;  %v555_v24 = vadd.f32 %v551_v45, %v2554_v33  ;;  %v556_v49 = vadd.f32 %v552_v60, %v2557_v8  ;;  %v227_v31 = vpop.permute.xlu1 %226  ;;  %v225_v11 = vpop.permute.xlu0 %224  ;;  %v1719_v8 = vld [vmem:[%s1917_s7 + $0x25] ss:$8 sm:$0x3] }
  0x97   : > { %v1009_v10 = vld [vmem:[#allocation2 + $0x28] sm:$0x1]  ;;  %v238_v30 = vsel %vm180_vm2, %v225_v11, %v227_v31  ;;  %v1232_v22 = vrot.slane %v2624_v48, 7  ;;  %v2654_v40 = vrot.slane %v1719_v8, %v1931_v15 }
  0x98   : > { %v1063_v17 = vadd.f32 %v1057_v0, %v1032_v39  ;;  %v1027_v28 = vmul.f32 %v2537_v19, %v1009_v10  ;;  %v553_v13 = vmul.f32 %v544_v55, %v238_v30  ;;  %v1168_v33 = vmul.f32 %v2608_v50, %v238_v30 }
  0x99   : > { %v2639_v27 = vmul.f32 %v1217_v35, %v238_v30  ;;  %v2642_v21 = vadd.f32 %v2972_v36, %v555_v24  ;;  %v2645_v38 = vadd.f32 %v2973_v63, %v556_v49  ;;  %v1233_v35 = vrot.slane %v1225_v26, 7  ;;  %v2975_v49 = vld [vmem:[#allocation3_spill] sm:$0xff]  ;;  %v2981_v63 = vld [vmem:[#allocation14_spill] sm:$0xff] }
  0x9a   : > { %v1033_v18 = vadd.f32 %v1027_v28, %v1974_v34  ;;  %v557_v0 = vadd.f32 %v553_v13, %v2579_v52  ;;  %v1174_v51 = vadd.f32 %v1168_v33, %v1143_v5  ;;  %v231_v19 = vpop.permute.xlu1 %230  ;;  %v229_v55 = vpop.permute.xlu0 %228  ;;  %v1104_v14 = vadd.f32 %v1090_v57, %v1063_v17  ;;  %v2974_v5 = vld [vmem:[#allocation4_spill] sm:$0xff]  ;;  %v2977_v28 = vld [vmem:[#allocation5_spill] sm:$0xff]  ;;  %v2979_v13 = vld [vmem:[#allocation6_spill] sm:$0xff] }
  0x9b   : > { %v1147_v59 = vld [vmem:[#allocation2 + $0x40] sm:$0xfe]  ;;  %v1148_v37 = vld [vmem:[#allocation2 + $0x78] sm:$0xfe]  ;;  %v1234_v44 = vrot.slane %v2639_v27, 7  ;;  %v239_v58 = vsel %vm180_vm2, %v227_v31, %v229_v55  ;;  %v2976_v31 = vrot.slane %v2975_v49, 7 }
  0x9c   : > { %v1064_v2 = vadd.f32 %v1058_v42, %v1033_v18  ;;  %v1166_v34 = vmul.f32 %v2608_v50, %v1147_v59  ;;  %v1167_v52 = vmul.f32 %v2630_v56, %v1148_v37  ;;  %v1205_v45 = vadd.f32 %v2974_v5, %v1174_v51  ;;  %v1779_v59 = vld [vmem:[%s2894_s0 + $0x78] sm:$0x1]  ;;  %v2993_v27 = vld [vmem:[#allocation15_spill] sm:$0xff] }
  0x9d   : > { %v1235_v9 = vsel %vm743_vm0, %v1232_v22, %v1234_v44  ;;  %v554_v57 = vmul.f32 %v2593_v29, %v239_v58  ;;  %v1169_v60 = vmul.f32 %v2630_v56, %v239_v58  ;;  %v2664_v54 = vmul.f32 %v1221_v62, %v239_v58  ;;  %v1794_v62 = vld [vmem:[%s1917_s7 + $0x30] ss:$8 sm:$0x3] }
  0x9e   : > { %v1172_v3 = vadd.f32 %v1166_v34, %v1141_v25  ;;  %v1173_v48 = vadd.f32 %v1167_v52, %v1142_v46  ;;  %v235_v42 = vpop.permute.xlu1 %234  ;;  %v233_v39 = vpop.permute.xlu0 %232  ;;  %v1105_v24 = vadd.f32 %v1092_v61, %v1064_v2  ;;  %v1145_v11 = vadd.f32 %v2976_v31, %v1104_v14  ;;  %v2982_v34 = vld [vmem:[#allocation8_spill] sm:$0xff] }
  0x9f   : > { %v558_v10 = vadd.f32 %v554_v57, %v2582_v20  ;;  %v1175_v26 = vadd.f32 %v1169_v60, %v2598_v53  ;;  %v1236_v29 = vrot.slane %v2664_v54, 7  ;;  %v240_v30 = vsel %vm180_vm2, %v231_v19, %v233_v39  ;;  %v2980_v53 = vld [vmem:[#allocation12_spill] sm:$0xff] }
  0xa0   : > { %v1203_v17 = vadd.f32 %v1197_v41, %v1172_v3  ;;  %v1204_v25 = vadd.f32 %v1198_v12, %v1173_v48  ;;  %v241_v46 = vsel %vm180_vm2, %v233_v39, %v235_v42  ;;  %253 = vst [vmem:[#allocation2 + $0x18] sm:$0x1] %v240_v30  ;;  %v2978_v4 = vrot.slane %v2977_v28, 7  ;;  %v2987_v42 = vld [vmem:[#allocation22_spill] sm:$0xff]  ;;  %v2988_v28 = vld [vmem:[#allocation9_spill] sm:$0xff] }
  0xa1   : > { %v1206_v33 = vadd.f32 %v2979_v13, %v1175_v26  ;;  %v1237_v20 = vsel %vm743_vm0, %v1233_v35, %v1236_v29  ;;  %254 = vst [vmem:[#allocation2 + $0x98] sm:$0x1] %v241_v46  ;;  %v2683_v36 = vadd.f32 %v2980_v53, %v557_v0  ;;  %v2686_v18 = vadd.f32 %v2981_v63, %v558_v10  ;;  %v1780_v0 = vld [vmem:[%s2894_s0 + $0x80] sm:$0x1]  ;;  %v1788_v26 = vld [vmem:[%s2894_s0 + $0x98] sm:$0xfe] }
  0xa2   : > { %v1146_v61 = vadd.f32 %v2978_v4, %v1105_v24  ;;  %v1244_v41 = vadd.f32 %v1232_v22, %v1203_v17  ;;  %v1245_v12 = vadd.f32 %v1233_v35, %v1204_v25  ;;  %v277_v51 = vpop.permute.xlu1 %276  ;;  %v275_v19 = vpop.permute.xlu0 %274  ;;  %v1361_v55 = vrot.slane %v1794_v62, %v1931_v15  ;;  %v1787_v22 = vld [vmem:[%s2894_s0 + $0x90] sm:$0xfe]  ;;  %v2989_v53 = vld [vmem:[#allocation19_spill] sm:$0xff] }
  0xa3   : > { %v1246_v14 = vadd.f32 %v1235_v9, %v1205_v45  ;;  %v292_v37 = vsel %vm180_vm2, %v275_v19, %v277_v51  ;;  %v598_v58 = vrot.slane %v1719_v8, %v1933_v16  ;;  %v1247_v2 = vadd.f32 %v1237_v20, %v1206_v33  ;;  %v1786_v45 = vld [vmem:[%s1917_s7 + $0x22] ss:$8 sm:$0x3]  ;;  %v2984_v9 = vld [vmem:[#allocation13_spill] sm:$0xff] }
  0xa4   : > { %305 = vst [vmem:[#allocation2 + $0x38] sm:$0xff] %v292_v37  ;;  %v601_v35 = vmul.f32 %v2654_v40, %v292_v37  ;;  %v2983_v52 = vrot.slane %v2982_v34, 7  ;;  %v2985_v57 = vrot.slane %v2984_v9, 7  ;;  %v1365_v3 = vrot.slane %v1794_v62, %v1933_v16  ;;  %v2986_v8 = vld [vmem:[#allocation21_spill] sm:$0xff] }
  0xa5   : > { %v1287_v48 = vadd.f32 %v2986_v8, %v1246_v14  ;;  %v1288_v39 = vadd.f32 %v2987_v42, %v1247_v2  ;;  %v1201_v24 = vmul.f32 %v1779_v59, %v2040_v6  ;;  %v1368_v31 = vmul.f32 %v1361_v55, %v292_v37  ;;  %v1725_v17 = vld [vmem:[%s1917_s7 + $0x36] ss:$8 sm:$0x3] }
  0xa6   : > { %v1285_v5 = vadd.f32 %v2983_v52, %v1244_v41  ;;  %v2706_v60 = vadd.f32 %v2985_v57, %v1245_v12  ;;  %v605_v49 = vadd.f32 %v601_v35, %v2642_v21  ;;  %v281_v10 = vpop.permute.xlu1 %280  ;;  %v279_v30 = vpop.permute.xlu0 %278  ;;  %v1202_v46 = vmul.f32 %v1780_v0, %v2043_v7  ;;  %v2990_v12 = vld [vmem:[#allocation11_spill] sm:$0xff] }
  0xa7   : > { %v1151_v25 = vld [vmem:[#allocation2 + $0x18] sm:$0x1]  ;;  %v2719_v62 = vrot.slane %v1786_v45, %v1931_v15  ;;  %v1341_v4 = vmul.f32 %v1787_v22, %v2988_v28  ;;  %v293_v6 = vsel %vm180_vm2, %v277_v51, %v279_v30  ;;  %v2731_v7 = vrot.slane %v1786_v45, %v1933_v16 }
  0xa8   : > { %v1152_v13 = vld [vmem:[#allocation2 + $0x98] sm:$0x1]  ;;  %v1170_v21 = vmul.f32 %v2608_v50, %v1151_v25  ;;  %306 = vst [vmem:[#allocation2 + $0x50] sm:$0xff] %v293_v6  ;;  %v602_v33 = vmul.f32 %v598_v58, %v293_v6  ;;  %v2724_v20 = vmul.f32 %v1365_v3, %v293_v6  ;;  %v2727_v63 = vadd.f32 %v2989_v53, %v605_v49 }
  0xa9   : > { %v1171_v41 = vmul.f32 %v2630_v56, %v1152_v13  ;;  %v1342_v19 = vmul.f32 %v1788_v26, %v2990_v12  ;;  %v2735_v14 = vrot.slane %v1725_v17, %v1931_v15  ;;  %v1376_v59 = vrot.slane %v1368_v31, 7  ;;  %v2992_v13 = vld [vmem:[#allocation18_spill] sm:$0xff] }
  0xaa   : > { %v1176_v51 = vadd.f32 %v1170_v21, %v1145_v11  ;;  %v606_v50 = vadd.f32 %v602_v33, %v2645_v38  ;;  %v285_v0 = vpop.permute.xlu1 %284  ;;  %v283_v37 = vpop.permute.xlu0 %282  ;;  %v2739_v2 = vrot.slane %v1725_v17, %v1933_v16  ;;  %v1377_v56 = vrot.slane %v2724_v20, 7 }
  0xab   : > { %v1177_v22 = vadd.f32 %v1171_v41, %v1146_v61  ;;  %v1291_v35 = vld [vmem:[#allocation2 + $0x38] sm:$0xfe]  ;;  %v294_v34 = vsel %vm180_vm2, %v281_v10, %v283_v37  ;;  %v295_v52 = vsel %vm180_vm2, %v283_v37, %v285_v0  ;;  %v1806_v0 = vld [vmem:[%s1917_s7 + $0x41] ss:$8 sm:$0x3] }
  0xac   : > { %v1207_v45 = vadd.f32 %v1201_v24, %v1176_v51  ;;  %v1310_v9 = vmul.f32 %v2719_v62, %v1291_v35  ;;  %v603_v11 = vmul.f32 %v2654_v40, %v294_v34  ;;  %v604_v57 = vmul.f32 %v598_v58, %v295_v52 }
  0xad   : > { %v1208_v38 = vadd.f32 %v1202_v46, %v1177_v22  ;;  %v1312_v8 = vmul.f32 %v2719_v62, %v294_v34  ;;  %v1313_v42 = vmul.f32 %v2731_v7, %v295_v52  ;;  %v2748_v49 = vmul.f32 %v1361_v55, %v294_v34  ;;  %v2995_v22 = vld [vmem:[#allocation16_spill] sm:$0xff] }
  0xae   : > { %v1316_v61 = vadd.f32 %v1310_v9, %v1285_v5  ;;  %v607_v31 = vadd.f32 %v603_v11, %v2683_v36  ;;  %v608_v10 = vadd.f32 %v604_v57, %v2686_v18  ;;  %v2752_v26 = vmul.f32 %v1365_v3, %v295_v52  ;;  %v289_v24 = vpop.permute.xlu1 %288  ;;  %v287_v30 = vpop.permute.xlu0 %286  ;;  %v2991_v18 = vld [vmem:[#allocation17_spill] sm:$0xff]  ;;  %v2998_v34 = vld [vmem:[#allocation20_spill] sm:$0xff] }
  0xaf   : > { %v1292_v17 = vld [vmem:[#allocation2 + $0x50] sm:$0xfe]  ;;  %v1318_v25 = vadd.f32 %v1312_v8, %v1287_v48  ;;  %v1319_v40 = vadd.f32 %v1313_v42, %v1288_v39  ;;  %v1378_v58 = vrot.slane %v2748_v49, 7  ;;  %v296_v46 = vsel %vm180_vm2, %v287_v30, %v289_v24  ;;  %v2999_v9 = vld [vmem:[#allocation24_spill] sm:$0xff]  ;;  %v3001_v8 = vld [vmem:[#allocation27_spill] sm:$0xff] }
  0xb0   : > { %v1347_v6 = vadd.f32 %v1341_v4, %v1316_v61  ;;  %v1311_v55 = vmul.f32 %v2731_v7, %v1292_v17  ;;  %v1380_v5 = vrot.slane %v2752_v26, 7  ;;  %309 = vst [vmem:[#allocation2 + $0xa8] sm:$0x1] %v296_v46  ;;  %v1248_v36 = vadd.f32 %v1234_v44, %v1207_v45  ;;  %v1791_v45 = vld [vmem:[%s2894_s0 + $0xc0] sm:$0x1] }
  0xb1   : > { %v1349_v3 = vadd.f32 %v2991_v18, %v1318_v25  ;;  %v1350_v21 = vadd.f32 %v2992_v13, %v1319_v40  ;;  %v1379_v48 = vsel %vm743_vm0, %v1376_v59, %v1378_v58  ;;  %v1249_v39 = vadd.f32 %v1236_v29, %v1208_v38  ;;  %v2997_v29 = vld [vmem:[#allocation23_spill] sm:$0xff]  ;;  %v3002_v25 = vld [vmem:[#allocation29_spill] sm:$0xff]  ;;  %v1799_v13 = vld [vmem:[%s2894_s0 + $0xd8] sm:$0xfe] }
  0xb2   : > { %v1388_v4 = vadd.f32 %v1376_v59, %v1347_v6  ;;  %v1317_v33 = vadd.f32 %v1311_v55, %v2706_v60  ;;  %v1381_v20 = vsel %vm743_vm0, %v1377_v56, %v1380_v5  ;;  %v2994_v44 = vrot.slane %v2993_v27, 7  ;;  %v331_v41 = vpop.permute.xlu1 %330  ;;  %v291_v51 = vpop.permute.xlu0 %290  ;;  %v1800_v27 = vld [vmem:[%s2894_s0 + $0xe0] sm:$0xfe] }
  0xb3   : > { %v297_v37 = vsel %vm180_vm2, %v289_v24, %v291_v51  ;;  %v2996_v35 = vrot.slane %v2995_v22, 7  ;;  %v631_v59 = vadd.f32 %v2997_v29, %v606_v50  ;;  %v632_v60 = vadd.f32 %v2998_v34, %v607_v31  ;;  %v3011_v49 = vld [vmem:[#allocation35_spill] sm:$0xff] }
  0xb4   : > { %v1289_v53 = vadd.f32 %v2994_v44, %v1248_v36  ;;  %v1348_v52 = vadd.f32 %v1342_v19, %v1317_v33  ;;  %310 = vst [vmem:[#allocation2 + $0x68] sm:$0x1] %v297_v37  ;;  %v3000_v11 = vrot.slane %v2999_v9, 7  ;;  %v1390_v38 = vadd.f32 %v1379_v48, %v1349_v3  ;;  %v1798_v19 = vld [vmem:[%s1917_s7 + $0x33] ss:$8 sm:$0x3] }
  0xb5   : > { %v1290_v54 = vadd.f32 %v2996_v35, %v1249_v39  ;;  %v2787_v42 = vadd.f32 %v3001_v8, %v608_v10  ;;  %v1505_v61 = vrot.slane %v1806_v0, %v1931_v15  ;;  %v1391_v24 = vadd.f32 %v1381_v20, %v1350_v21  ;;  %v3003_v10 = vld [vmem:[#allocation32_spill] sm:$0xff]  ;;  %v3004_v48 = vld [vmem:[#allocation25_spill] sm:$0xff]  ;;  %v3008_v9 = vld [vmem:[#allocation31_spill] sm:$0xff] }
  0xb6   : > { %v2784_v57 = vadd.f32 %v3000_v11, %v1388_v4  ;;  %v1389_v50 = vadd.f32 %v1377_v56, %v1348_v52  ;;  %v335_v30 = vpop.permute.xlu1 %334  ;;  %v333_v31 = vpop.permute.xlu0 %332  ;;  %v1509_v17 = vrot.slane %v1806_v0, %v1933_v16  ;;  %v1431_v40 = vadd.f32 %v3002_v25, %v1390_v38  ;;  %v1792_v56 = vld [vmem:[%s2894_s0 + $0xc8] sm:$0x1]  ;;  %v3009_v38 = vld [vmem:[#allocation38_spill] sm:$0xff] }
  0xb7   : > { %v1295_v46 = vld [vmem:[#allocation2 + $0xa8] sm:$0x1]  ;;  %v1345_v6 = vmul.f32 %v1791_v45, %v2988_v28  ;;  %v348_v55 = vsel %vm180_vm2, %v331_v41, %v333_v31  ;;  %v349_v36 = vsel %vm180_vm2, %v333_v31, %v335_v30  ;;  %v1432_v18 = vadd.f32 %v3003_v10, %v1391_v24 }
  0xb8   : > { %v1314_v3 = vmul.f32 %v2719_v62, %v1295_v46  ;;  %361 = vst [vmem:[#allocation2 + $0x30] sm:$0xff] %v348_v55  ;;  %362 = vst [vmem:[#allocation2 + $0x58] sm:$0xff] %v349_v36  ;;  %v651_v28 = vmul.f32 %v2735_v14, %v348_v55  ;;  %v652_v21 = vmul.f32 %v2739_v2, %v349_v36  ;;  %v3005_v39 = vrot.slane %v3004_v48, 7 }
  0xb9   : > { %v2809_v33 = vrot.slane %v1798_v19, %v1931_v15  ;;  %v2811_v62 = vmul.f32 %v1505_v61, %v348_v55  ;;  %v2817_v51 = vmul.f32 %v1509_v17, %v349_v36  ;;  %v1346_v15 = vmul.f32 %v1792_v56, %v2990_v12 }
  0xba   : > { %v1430_v4 = vadd.f32 %v3005_v39, %v1389_v50  ;;  %v1320_v20 = vadd.f32 %v1314_v3, %v1289_v53  ;;  %v655_v44 = vadd.f32 %v651_v28, %v2727_v63  ;;  %v656_v41 = vadd.f32 %v652_v21, %v631_v59  ;;  %v339_v0 = vpop.permute.xlu1 %338  ;;  %v337_v37 = vpop.permute.xlu0 %336  ;;  %v3006_v53 = vld [vmem:[#allocation33_spill] sm:$0xff]  ;;  %v3007_v59 = vld [vmem:[#allocation30_spill] sm:$0xff] }
  0xbb   : > { %v1296_v22 = vld [vmem:[#allocation2 + $0x68] sm:$0x1]  ;;  %v2821_v35 = vrot.slane %v1798_v19, %v1933_v16  ;;  %v1485_v29 = vmul.f32 %v1799_v13, %v3006_v53  ;;  %v350_v34 = vsel %vm180_vm2, %v337_v37, %v339_v0  ;;  %v1486_v8 = vmul.f32 %v1800_v27, %v3009_v38  ;;  %v3010_v13 = vld [vmem:[#allocation34_spill] sm:$0xff] }
  0xbc   : > { %v1351_v52 = vadd.f32 %v1345_v6, %v1320_v20  ;;  %v1315_v63 = vmul.f32 %v2731_v7, %v1296_v22  ;;  %v680_v45 = vadd.f32 %v3007_v59, %v655_v44  ;;  %v681_v11 = vadd.f32 %v3008_v9, %v656_v41  ;;  %v3012_v22 = vld [vmem:[#allocation39_spill] sm:$0xff] }
  0xbd   : > { %v653_v24 = vmul.f32 %v2735_v14, %v350_v34  ;;  %v1456_v12 = vmul.f32 %v2809_v33, %v350_v34  ;;  %v2831_v50 = vmul.f32 %v1505_v61, %v350_v34  ;;  %v1520_v30 = vrot.slane %v2811_v62, 7 }
  0xbe   : > { %v1321_v16 = vadd.f32 %v1315_v63, %v1290_v54  ;;  %1731 = vst [vmem:[%s2278_s13 + $0x20] sm:$0xff] %v680_v45  ;;  %1732 = vst [vmem:[%s2278_s13 + $0x28] sm:$0xff] %v681_v11  ;;  %v1521_v31 = vrot.slane %v2817_v51, 7  ;;  %v343_v7 = vpop.permute.xlu1 %342  ;;  %v341_v19 = vpop.permute.xlu0 %340  ;;  %v1392_v25 = vadd.f32 %v1378_v58, %v1351_v52  ;;  %v3015_v63 = vld [vmem:[#allocation26_spill] sm:$0xff] }
  0xbf   : > { %v1435_v46 = vld [vmem:[#allocation2 + $0x30] sm:$0xfe]  ;;  %v1436_v6 = vld [vmem:[#allocation2 + $0x58] sm:$0xfe]  ;;  %v657_v55 = vadd.f32 %v653_v24, %v632_v60  ;;  %v1462_v14 = vadd.f32 %v1456_v12, %v1431_v40  ;;  %v1522_v36 = vrot.slane %v2831_v50, 7  ;;  %v351_v54 = vsel %vm180_vm2, %v339_v0, %v341_v19  ;;  %v3019_v50 = vld [vmem:[#allocation36_spill] sm:$0xff] }
  0xc0   : > { %v1352_v61 = vadd.f32 %v1346_v15, %v1321_v16  ;;  %v1454_v10 = vmul.f32 %v2809_v33, %v1435_v46  ;;  %v1455_v3 = vmul.f32 %v2821_v35, %v1436_v6  ;;  %v654_v56 = vmul.f32 %v2739_v2, %v351_v54 }
  0xc1   : > { %v682_v28 = vadd.f32 %v3010_v13, %v657_v55  ;;  %v1493_v58 = vadd.f32 %v3011_v49, %v1462_v14  ;;  %v1523_v21 = vsel %vm743_vm0, %v1520_v30, %v1522_v36  ;;  %v1457_v60 = vmul.f32 %v2821_v35, %v351_v54 }
  0xc2   : > { %v1460_v40 = vadd.f32 %v1454_v10, %v2784_v57  ;;  %v1461_v48 = vadd.f32 %v1455_v3, %v1430_v4  ;;  %v658_v39 = vadd.f32 %v654_v56, %v2787_v42  ;;  %v1515_v62 = vmul.f32 %v1509_v17, %v351_v54  ;;  %v347_v20 = vpop.permute.xlu1 %346  ;;  %v345_v27 = vpop.permute.xlu0 %344  ;;  %v3013_v57 = vld [vmem:[#allocation40_spill] sm:$0xff]  ;;  %v3014_v17 = vld [vmem:[#allocation41_spill] sm:$0xff] }
  0xc3   : > { %1733 = vst [vmem:[%s2278_s13 + $0x30] sm:$0xff] %v682_v28  ;;  %v1534_v44 = vadd.f32 %v1523_v21, %v1493_v58  ;;  %v1463_v2 = vadd.f32 %v1457_v60, %v1432_v18  ;;  %v352_v41 = vsel %vm180_vm2, %v343_v7, %v345_v27  ;;  %v353_v51 = vsel %vm180_vm2, %v345_v27, %v347_v20  ;;  %v3021_v58 = vld [vmem:[#allocation37_spill] sm:$0xff] }
  0xc4   : > { %v1491_v0 = vadd.f32 %v1485_v29, %v1460_v40  ;;  %v1492_v37 = vadd.f32 %v1486_v8, %v1461_v48  ;;  %v683_v15 = vadd.f32 %v3012_v22, %v658_v39  ;;  %v1524_v34 = vrot.slane %v1515_v62, 7  ;;  %365 = vst [vmem:[#allocation2 + $0x20] sm:$0x1] %v352_v41  ;;  %366 = vst [vmem:[#allocation2 + $0x8] sm:$0x1] %v353_v51  ;;  %v3017_v8 = vld [vmem:[#allocation28_spill] sm:$0xff] }
  0xc5   : > { %v1575_v42 = vadd.f32 %v3013_v57, %v1534_v44  ;;  %v1494_v4 = vadd.f32 %v3014_v17, %v1463_v2  ;;  %v1393_v52 = vadd.f32 %v1380_v5, %v1352_v61  ;;  %v3016_v18 = vrot.slane %v3015_v63, 7  ;;  %v1803_v5 = vld [vmem:[%s2894_s0 + $0x108] sm:$0x1] }
  0xc6   : > { %v1532_v45 = vadd.f32 %v1520_v30, %v1491_v0  ;;  %v1533_v9 = vadd.f32 %v1521_v31, %v1492_v37  ;;  %1734 = vst [vmem:[%s2278_s13 + $0x38] sm:$0xff] %v683_v15  ;;  %v1525_v29 = vsel %vm743_vm0, %v1521_v31, %v1524_v34  ;;  %v3018_v24 = vrot.slane %v3017_v8, 7  ;;  %v1804_v31 = vld [vmem:[%s2894_s0 + $0x110] sm:$0x1] }
  0xc7   : > { %v1433_v59 = vadd.f32 %v3016_v18, %v1392_v25  ;;  %v1535_v11 = vadd.f32 %v1525_v29, %v1494_v4  ;;  %v3020_v16 = vrot.slane %v3019_v50, 7  ;;  %v1586_v46 = vrot.slane %v1575_v42, 1 }
  0xc8   : > { %v1434_v12 = vadd.f32 %v3018_v24, %v1393_v52  ;;  %v1574_v26 = vadd.f32 %v1562_v23, %v1533_v9  ;;  %v1489_v47 = vmul.f32 %v1803_v5, %v3006_v53  ;;  %v3022_v21 = vrot.slane %v3021_v58, 7 }
  0xc9   : > { %v1573_v7 = vadd.f32 %v3020_v16, %v1532_v45  ;;  %v1576_v30 = vadd.f32 %v2509_v43, %v1535_v11  ;;  %v1490_v43 = vmul.f32 %v1804_v31, %v3009_v38 }
  0xca   : > { %v1588_v25 = vrot.slane %v1574_v26, 1 }
  0xcb   : > { %v1585_v19 = vrot.slane %v1573_v7, 1  ;;  %v1589_v6 = vrot.slane %v1576_v30, 1  ;;  %v1439_v55 = vld [vmem:[#allocation2 + $0x20] sm:$0x1]  ;;  %v1440_v14 = vld [vmem:[#allocation2 + $0x8] sm:$0x1] }
  0xcc   : > { %v1458_v54 = vmul.f32 %v2809_v33, %v1439_v55  ;;  %v1459_v61 = vmul.f32 %v2821_v35, %v1440_v14 }
  0xcd   : > { %v1587_v23 = vsel %vm984_vm1, %v1585_v19, %v1586_v46  ;;  %v1590_v10 = vsel %vm984_vm1, %v1588_v25, %v1589_v6 }
  0xce   : > { %1810 = vst [vmem:[%s2278_s13 + $0x60] sm:$0xff] %v1587_v23  ;;  %1811 = vst [vmem:[%s2278_s13 + $0x68] sm:$0xff] %v1590_v10  ;;  %v1464_v3 = vadd.f32 %v1458_v54, %v1433_v59  ;;  %v1465_v56 = vadd.f32 %v1459_v61, %v1434_v12 }
  0xd0   : > { %v1495_v13 = vadd.f32 %v1489_v47, %v1464_v3  ;;  %v1496_v28 = vadd.f32 %v1490_v43, %v1465_v56 }
  0xd2   : > { %v1536_v49 = vadd.f32 %v1522_v36, %v1495_v13  ;;  %v1537_v53 = vadd.f32 %v1524_v34, %v1496_v28 }
  0xd4   : > { %v1577_v60 = vadd.f32 %v3022_v21, %v1536_v49  ;;  %v1578_v33 = vadd.f32 %v1565_v1, %v1537_v53 }
  0xd6   : > { %v1591_v35 = vrot.slane %v1577_v60, 1  ;;  %v1593_v38 = vrot.slane %v1578_v33, 1 }
  0xd8   : > { %v1592_v40 = vsel %vm984_vm1, %v1586_v46, %v1591_v35  ;;  %v1594_v48 = vsel %vm984_vm1, %v1589_v6, %v1593_v38 }
  0xd9   : > { %1812 = vst [vmem:[%s2278_s13 + $0x70] sm:$0xff] %v1592_v40  ;;  %1813 = vst [vmem:[%s2278_s13 + $0x78] sm:$0xff] %v1594_v48 }
  0xda PF: > { %s12_s9 = sadd.s32 1, %s1833_s9  }
  0xdb   : > { %p9_p4 = scmp.ge.s32.totalorder %s12_s9, 4  }
  0xdd   :  { %11 = sbr.rel (!%p9_p4) target bundleno = 1 (0x1), region = 103 }

</bundles_post_ra>
